<compile_context>
chip_gen: v7x
topology: tpu7x:2x2x1
jax: 0.10.0
libtpu: 0.0.40
codegen_flags: <defaults>
</compile_context>

<pallas_src>
import math
from functools import partial

import numpy as np
import jax
import jax.numpy as jnp
from jax import lax
from jax.experimental import pallas as pl
from jax.experimental.pallas import tpu as pltpu


# ----------------------------- small helpers ------------------------------ #
def _sigmoid(v):
    return 1.0 / (1.0 + jnp.exp(-v))


def _softplus(v):
    # matches torch.F.softplus (threshold=20) for moderate values
    return jnp.where(v > 20.0, v, jnp.log(1.0 + jnp.exp(jnp.minimum(v, 20.0))))


_VMEM_LIMIT = None


def _vmem_limit_bytes():
    """Generation-aware scoped VMEM limit (~3/4 of physical; v7x has 64 MiB)."""
    global _VMEM_LIMIT
    if _VMEM_LIMIT is None:
        try:
            cap = int(getattr(pltpu.get_tpu_info(), "vmem_capacity_bytes", 0))
        except Exception:
            cap = 0
        lim = (cap * 3) // 4 if cap > 0 else 48 * 1024 * 1024
        _VMEM_LIMIT = max(lim, 32 * 1024 * 1024)
    return _VMEM_LIMIT


def _expansion_mats(d_state, d_inner):
    """0/1 matrices for the lane-flat state layout (lane index = s*d_inner + d):
       E (d_state, ns)  : expands per-state values across their d_inner lanes
       T (d_inner, ns)  : tiles per-channel values across the d_state segments
       TT = T^T (ns, d_inner): sums the d_state segments back to d_inner lanes."""
    E = np.kron(np.eye(d_state, dtype=np.float32), np.ones((1, d_inner), np.float32))
    T = np.kron(np.ones((1, d_state), np.float32), np.eye(d_inner, dtype=np.float32))
    return jnp.asarray(E), jnp.asarray(T), jnp.asarray(np.ascontiguousarray(T.T))


# ------------------- Pallas kernel: one fused Caduceus block ---------------- #
# One grid step = one batch element.  Implements:
#   residual = hs (+ residual) ; normed = LayerNorm(residual)
#   hs = Mamba_fwd(normed) + flip(Mamba_rev(flip(normed)))   (tied weights)
# The reverse direction never flips data: anti-causal conv (reversed taps,
# right pad) + a right-to-left scan.  Last layer also emits norm_f(hs + residual).
def fused_layer_kernel(*refs, eps, is_first, is_last):
    it = iter(refs)
    hs_ref = next(it)
    res_ref = None if is_first else next(it)
    nw_ref, nb_ref = next(it), next(it)
    in_ref, outw_ref = next(it), next(it)
    E_ref, T_ref, TT_ref = next(it), next(it), next(it)
    fwd_refs = tuple(next(it) for _ in range(7))
    rev_refs = tuple(next(it) for _ in range(7))
    fnw_ref, fnb_ref = (next(it), next(it)) if is_last else (None, None)
    hs_out_ref = next(it)
    res_out_ref = None if is_last else next(it)
    xpad_ref = next(it)

    L, D = hs_ref.shape
    K, d_inner = fwd_refs[0].shape
    d_state = E_ref.shape[0]
    dt_rank = fwd_refs[3].shape[0]

    def layernorm(v, w, b):
        mu = jnp.mean(v, axis=-1, keepdims=True)
        cen = v - mu
        var = jnp.mean(cen * cen, axis=-1, keepdims=True)
        return cen * lax.rsqrt(var + eps) * w + b

    # ---- fused add + LayerNorm prologue (residual_in_fp32) ----
    ssum = hs_ref[...] if is_first else hs_ref[...] + res_ref[...]
    if not is_last:
        res_out_ref[...] = ssum
    normed = layernorm(ssum, nw_ref[...], nb_ref[...])

    # ---- single tied in_proj shared by both directions ----
    xz = jnp.dot(normed, in_ref[...], preferred_element_type=jnp.float32)
    x = xz[:, :d_inner]
    z = xz[:, d_inner:]
    gate = z * _sigmoid(z)                                   # SiLU(z), shared gate

    # ---- stage ONE zero-padded copy of x; both conv directions read shifted
    #      pl.ds windows from it (no concatenate-then-slice value relayouts) ----
    xpad_ref[...] = jnp.zeros((L + 2 * (K - 1), d_inner), jnp.float32)
    xpad_ref[pl.ds(K - 1, L), :] = x

    def shift_rows(m, s, fill, down):
        pad = jnp.full((s, m.shape[1]), fill, m.dtype)
        if down:                                             # out[i] = m[i-s]
            return jnp.concatenate([pad, m[:m.shape[0] - s, :]], axis=0)
        return jnp.concatenate([m[s:, :], pad], axis=0)      # out[i] = m[i+s]

    def linear_scan(dA, dBu, reverse):
        # Inclusive Hillis–Steele scan of h[i] = dA[i]*h[i∓1] + dBu[i] over the
        # whole (L, ns) slabs: ceil(log2 L) vectorised combine steps, no serial
        # fori_loop, no per-row scratch traffic, all vreg sublanes utilised.
        a, b = dA, dBu
        s = 1
        while s < L:
            a_sh = shift_rows(a, s, 1.0, down=not reverse)
            b_sh = shift_rows(b, s, 0.0, down=not reverse)
            b = a * b_sh + b
            a = a * a_sh
            s *= 2
        return b

    def direction(prefs, pad_off, reverse):
        cw_ref, cb_ref, xpw_ref, dtw_ref, dtb_ref, negA_ref, dsk_ref = prefs
        # depthwise causal (fwd) / anti-causal (rev: reversed taps) conv + SiLU
        acc = cb_ref[...]
        for k in range(K):
            wk = K - 1 - k if reverse else k
            acc = acc + xpad_ref[pl.ds(pad_off + k, L), :] * cw_ref[wk:wk + 1, :]
        xc = acc * _sigmoid(acc)
        # ONE x_proj matmul per direction; dt/B/C are narrow static slices
        xdbl = jnp.dot(xc, xpw_ref[...], preferred_element_type=jnp.float32)
        dt = _softplus(jnp.dot(xdbl[:, :dt_rank], dtw_ref[...],
                               preferred_element_type=jnp.float32) + dtb_ref[...])
        Bm = xdbl[:, dt_rank:dt_rank + d_state]
        Cm = xdbl[:, dt_rank + d_state:dt_rank + 2 * d_state]
        # lane-flat (L, d_state*d_inner) slabs via 0/1 expansion matmuls on the
        # otherwise-idle MXU (no per-state concatenates / single-lane broadcasts)
        dA = jnp.exp(jnp.dot(dt, T_ref[...], preferred_element_type=jnp.float32)
                     * negA_ref[...])
        dBu = (jnp.dot(dt * xc, T_ref[...], preferred_element_type=jnp.float32)
               * jnp.dot(Bm, E_ref[...], preferred_element_type=jnp.float32))
        h = linear_scan(dA, dBu, reverse)
        # fused C-contraction: sum over states == one (L,ns)x(ns,d_inner) matmul
        ce = jnp.dot(Cm, E_ref[...], preferred_element_type=jnp.float32)
        y = jnp.dot(h * ce, TT_ref[...], preferred_element_type=jnp.float32)
        return y + xc * dsk_ref[...]                         # D skip

    y_f = direction(fwd_refs, 0, reverse=False)
    y_r = direction(rev_refs, K - 1, reverse=True)
    # 'add' strategy + tied out_proj: (y_f*g)@W + (y_r*g)@W == ((y_f+y_r)*g)@W
    y = (y_f + y_r) * gate
    proj = jnp.dot(y, outw_ref[...], preferred_element_type=jnp.float32)

    if is_last:
        # fused epilogue: final residual add + norm_f (no extra pallas_call)
        hs_out_ref[...] = layernorm(proj + ssum, fnw_ref[...], fnb_ref[...])
    else:
        hs_out_ref[...] = proj


def fused_layer(hs, residual, lp, consts, *, is_first, is_last,
                fnorm_w=None, fnorm_b=None, eps=1e-5):
    """One Caduceus block.  Returns (hs, residual), or the final normed output
    when is_last (norm_f fused into the last layer's kernel)."""
    B, L, D = hs.shape
    fwd, rev = lp["fwd"], lp["rev"]
    # Shared gate / folded out_proj algebra requires tied projections.
    assert fwd["in_wT"] is rev["in_wT"] and fwd["out_wT"] is rev["out_wT"], (
        "fused kernel requires bidirectional_weight_tie=True (tied in/out proj)")
    K, d_inner = fwd["conv_wT"].shape
    d_state = fwd["A_logT"].shape[0]
    ns = d_state * d_inner
    E, T, TT = consts

    def dir_operands(p):
        negA = (-jnp.exp(p["A_logT"])).reshape(1, ns)   # lane s*d_inner+d = A[s,d]
        return (p["conv_wT"], p["conv_b"], p["xproj_wT"],
                p["dt_wT"], p["dt_b"], negA, p["Dskip"])

    seq_spec = pl.BlockSpec((None, L, D), lambda b: (b, 0, 0))

    def full_spec(a):
        return pl.BlockSpec(a.shape, lambda b, _n=a.ndim: (0,) * _n)

    operands, in_specs = [hs], [seq_spec]
    if not is_first:                       # layer 0: skip the zero-residual DMA
        operands.append(residual)
        in_specs.append(seq_spec)
    rest = [lp["norm_w"].reshape(1, D), lp["norm_b"].reshape(1, D),
            fwd["in_wT"], fwd["out_wT"], E, T, TT,
            *dir_operands(fwd), *dir_operands(rev)]
    if is_last:
        rest += [fnorm_w.reshape(1, D), fnorm_b.reshape(1, D)]
    operands += rest
    in_specs += [full_spec(a) for a in rest]

    if is_last:
        out_shape = jax.ShapeDtypeStruct((B, L, D), jnp.float32)
        out_specs = seq_spec
    else:
        out_shape = (jax.ShapeDtypeStruct((B, L, D), jnp.float32),
                     jax.ShapeDtypeStruct((B, L, D), jnp.float32))
        out_specs = (seq_spec, seq_spec)

    return pl.pallas_call(
        partial(fused_layer_kernel, eps=eps, is_first=is_first, is_last=is_last),
        grid=(B,),
        in_specs=in_specs,
        out_specs=out_specs,
        out_shape=out_shape,
        scratch_shapes=[pltpu.VMEM((L + 2 * (K - 1), d_inner), jnp.float32)],
        compiler_params=pltpu.CompilerParams(
            dimension_semantics=("parallel",),
            vmem_limit_bytes=_vmem_limit_bytes()),
    )(*operands)


# ---------------------------- model (JAX glue) ------------------------------ #
def caduceus_forward(input_ids, params, eps=1e-5):
    """CaduceusMixerModel.forward (output_hidden_states=False).
    input_ids: (B, L) int32 -> hidden_states (B, L, D) float32."""
    hs = params["embedding"][input_ids]            # embedding gather (plain JAX)
    layers = params["layers"]
    n_layer = len(layers)
    d_state, d_inner = layers[0]["fwd"]["A_logT"].shape
    consts = _expansion_mats(d_state, d_inner)
    residual = None
    for i, lp in enumerate(layers):
        is_first, is_last = (i == 0), (i == n_layer - 1)
        out = fused_layer(hs, residual, lp, consts, is_first=is_first,
                          is_last=is_last, fnorm_w=params["norm_f_w"],
                          fnorm_b=params["norm_f_b"], eps=eps)
        if is_last:
            return out
        hs, residual = out
    return hs


# ---------------------- pure-JAX reference (for check) ---------------------- #
def _mm(a, b):
    return jnp.dot(a, b, precision=lax.Precision.HIGHEST)


def _mamba_ref(hs, p):
    B, L, D = hs.shape
    K, d_inner = p["conv_wT"].shape
    d_state = p["A_logT"].shape[0]
    dt_rank = p["dt_wT"].shape[0]
    xz = _mm(hs, p["in_wT"])
    x, z = xz[..., :d_inner], xz[..., d_inner:]
    xpad = jnp.pad(x, ((0, 0), (K - 1, 0), (0, 0)))
    xc = sum(xpad[:, k:k + L, :] * p["conv_wT"][k] for k in range(K)) + p["conv_b"][0]
    xc = xc * _sigmoid(xc)
    x_dbl = _mm(xc, p["xproj_wT"])
    dt = _softplus(_mm(x_dbl[..., :dt_rank], p["dt_wT"]) + p["dt_b"][0])
    Bm = x_dbl[..., dt_rank:dt_rank + d_state]
    Cm = x_dbl[..., dt_rank + d_state:dt_rank + 2 * d_state]
    A = -jnp.exp(p["A_logT"].T)                               # (d_inner, d_state)
    state = jnp.zeros((B, d_inner, d_state), jnp.float32)
    ys = []
    for l in range(L):
        dA = jnp.exp(dt[:, l, :, None] * A[None])
        dBu = dt[:, l, :, None] * Bm[:, l, None, :] * xc[:, l, :, None]
        state = dA * state + dBu
        ys.append(jnp.einsum("bds,bs->bd", state, Cm[:, l],
                             precision=lax.Precision.HIGHEST))
    y = jnp.stack(ys, axis=1)
    y = y + xc * p["Dskip"][0]
    y = y * (z * _sigmoid(z))
    return _mm(y, p["out_wT"])


def _ln_ref(x, w, b, eps=1e-5):
    mu = jnp.mean(x, axis=-1, keepdims=True)
    var = jnp.mean((x - mu) ** 2, axis=-1, keepdims=True)
    return (x - mu) * lax.rsqrt(var + eps) * w + b


def caduceus_ref(input_ids, params):
    hs = params["embedding"][input_ids]
    residual = jnp.zeros_like(hs)
    for lp in params["layers"]:
        residual = hs + residual
        normed = _ln_ref(residual, lp["norm_w"], lp["norm_b"])
        out_f = _mamba_ref(normed, lp["fwd"])
        out_r = jnp.flip(_mamba_ref(jnp.flip(normed, axis=1), lp["rev"]), axis=1)
        hs = out_f + out_r
    residual = hs + residual
    return _ln_ref(residual, params["norm_f_w"], params["norm_f_b"])


# ----------------------------- init ----------------------------------------- #
def init_params(key, vocab, d_model, n_layer, d_state, d_conv, expand):
    d_inner = expand * d_model
    dt_rank = math.ceil(d_model / 16)
    keys = iter(jax.random.split(key, 256))

    def nrm(shape, scale=0.1):
        return scale * jax.random.normal(next(keys), shape, jnp.float32)

    A_logT = jnp.broadcast_to(
        jnp.log(jnp.arange(1, d_state + 1, dtype=jnp.float32))[:, None],
        (d_state, d_inner))

    params = {"embedding": nrm((vocab, d_model), 0.3)}
    layers = []
    for _ in range(n_layer):
        in_wT = nrm((d_model, 2 * d_inner))      # tied fwd/rev (weight_tie=True)
        out_wT = nrm((d_inner, d_model))

        def direction():
            return dict(
                in_wT=in_wT, out_wT=out_wT,
                conv_wT=nrm((d_conv, d_inner), 0.2),
                conv_b=nrm((1, d_inner), 0.1),
                xproj_wT=nrm((d_inner, dt_rank + 2 * d_state)),
                dt_wT=nrm((dt_rank, d_inner), 0.5),
                dt_b=nrm((1, d_inner), 0.1),
                A_logT=A_logT,
                Dskip=jnp.ones((1, d_inner), jnp.float32),
            )

        layers.append(dict(norm_w=jnp.ones((d_model,), jnp.float32),
                           norm_b=jnp.zeros((d_model,), jnp.float32),
                           fwd=direction(), rev=direction()))
    params["layers"] = layers
    params["norm_f_w"] = jnp.ones((d_model,), jnp.float32)
    params["norm_f_b"] = jnp.zeros((d_model,), jnp.float32)
    return params


# ------------------------------ main ----------------------------------------- #
if __name__ == "__main__":
    B, L = 2, 8
    vocab, d_model, n_layer = 12, 32, 2
    d_state, d_conv, expand = 8, 4, 2

    root = jax.random.PRNGKey(0)
    k_params, k_ids = jax.random.split(root)
    params = init_params(k_params, vocab, d_model, n_layer, d_state, d_conv, expand)
    input_ids = jax.random.randint(k_ids, (B, L), 0, vocab, dtype=jnp.int32)

    out = caduceus_forward(input_ids, params)
    out = jax.block_until_ready(out)

    ref = caduceus_ref(input_ids, params)
    assert out.shape == (B, L, d_model)
    err = float(np.max(np.abs(np.asarray(out) - np.asarray(ref))))
    assert np.allclose(np.asarray(out), np.asarray(ref), atol=1e-4, rtol=1e-4), \
        f"Pallas output does not match reference (max abs err = {err:.3e})"
    print("KERNEL_OK")
</pallas_src>

<mosaic_0001>
module attributes {stable_mosaic.version = 11 : i64} {
  func.func @fused_layer_kernel(%arg0: i32, %arg1: memref<1x8x32xf32, #tpu.memory_space<vmem>>, %arg2: memref<1x32xf32, #tpu.memory_space<vmem>>, %arg3: memref<1x32xf32, #tpu.memory_space<vmem>>, %arg4: memref<32x128xf32, #tpu.memory_space<vmem>>, %arg5: memref<64x32xf32, #tpu.memory_space<vmem>>, %arg6: memref<8x512xf32, #tpu.memory_space<vmem>>, %arg7: memref<64x512xf32, #tpu.memory_space<vmem>>, %arg8: memref<512x64xf32, #tpu.memory_space<vmem>>, %arg9: memref<4x64xf32, #tpu.memory_space<vmem>>, %arg10: memref<1x64xf32, #tpu.memory_space<vmem>>, %arg11: memref<64x18xf32, #tpu.memory_space<vmem>>, %arg12: memref<2x64xf32, #tpu.memory_space<vmem>>, %arg13: memref<1x64xf32, #tpu.memory_space<vmem>>, %arg14: memref<1x512xf32, #tpu.memory_space<vmem>>, %arg15: memref<1x64xf32, #tpu.memory_space<vmem>>, %arg16: memref<4x64xf32, #tpu.memory_space<vmem>>, %arg17: memref<1x64xf32, #tpu.memory_space<vmem>>, %arg18: memref<64x18xf32, #tpu.memory_space<vmem>>, %arg19: memref<2x64xf32, #tpu.memory_space<vmem>>, %arg20: memref<1x64xf32, #tpu.memory_space<vmem>>, %arg21: memref<1x512xf32, #tpu.memory_space<vmem>>, %arg22: memref<1x64xf32, #tpu.memory_space<vmem>>, %arg23: memref<1x8x32xf32, #tpu.memory_space<vmem>>, %arg24: memref<1x8x32xf32, #tpu.memory_space<vmem>>, %arg25: memref<14x64xf32, #tpu.memory_space<vmem>>) attributes {dimension_semantics = [#tpu.dimension_semantics<parallel>], iteration_bounds = array<i64: 2>, scalar_prefetch = 0 : i64, scratch_operands = 1 : i64, tpu.core_type = #tpu.core_type<tc>, window_params = [{transform_indices = @transform_0, window_bounds = array<i64: 1, 8, 32>}, {pipeline_mode = #tpu.pipeline_mode<synchronous>, transform_indices = @transform_1, window_bounds = array<i64: 1, 32>}, {pipeline_mode = #tpu.pipeline_mode<synchronous>, transform_indices = @transform_2, window_bounds = array<i64: 1, 32>}, {pipeline_mode = #tpu.pipeline_mode<synchronous>, transform_indices = @transform_3, window_bounds = array<i64: 32, 128>}, {pipeline_mode = #tpu.pipeline_mode<synchronous>, transform_indices = @transform_4, window_bounds = array<i64: 64, 32>}, {pipeline_mode = #tpu.pipeline_mode<synchronous>, transform_indices = @transform_5, window_bounds = array<i64: 8, 512>}, {pipeline_mode = #tpu.pipeline_mode<synchronous>, transform_indices = @transform_6, window_bounds = array<i64: 64, 512>}, {pipeline_mode = #tpu.pipeline_mode<synchronous>, transform_indices = @transform_7, window_bounds = array<i64: 512, 64>}, {pipeline_mode = #tpu.pipeline_mode<synchronous>, transform_indices = @transform_8, window_bounds = array<i64: 4, 64>}, {pipeline_mode = #tpu.pipeline_mode<synchronous>, transform_indices = @transform_9, window_bounds = array<i64: 1, 64>}, {pipeline_mode = #tpu.pipeline_mode<synchronous>, transform_indices = @transform_10, window_bounds = array<i64: 64, 18>}, {pipeline_mode = #tpu.pipeline_mode<synchronous>, transform_indices = @transform_11, window_bounds = array<i64: 2, 64>}, {pipeline_mode = #tpu.pipeline_mode<synchronous>, transform_indices = @transform_12, window_bounds = array<i64: 1, 64>}, {pipeline_mode = #tpu.pipeline_mode<synchronous>, transform_indices = @transform_13, window_bounds = array<i64: 1, 512>}, {pipeline_mode = #tpu.pipeline_mode<synchronous>, transform_indices = @transform_14, window_bounds = array<i64: 1, 64>}, {pipeline_mode = #tpu.pipeline_mode<synchronous>, transform_indices = @transform_15, window_bounds = array<i64: 4, 64>}, {pipeline_mode = #tpu.pipeline_mode<synchronous>, transform_indices = @transform_16, window_bounds = array<i64: 1, 64>}, {pipeline_mode = #tpu.pipeline_mode<synchronous>, transform_indices = @transform_17, window_bounds = array<i64: 64, 18>}, {pipeline_mode = #tpu.pipeline_mode<synchronous>, transform_indices = @transform_18, window_bounds = array<i64: 2, 64>}, {pipeline_mode = #tpu.pipeline_mode<synchronous>, transform_indices = @transform_19, window_bounds = array<i64: 1, 64>}, {pipeline_mode = #tpu.pipeline_mode<synchronous>, transform_indices = @transform_20, window_bounds = array<i64: 1, 512>}, {pipeline_mode = #tpu.pipeline_mode<synchronous>, transform_indices = @transform_21, window_bounds = array<i64: 1, 64>}, {transform_indices = @transform_22, window_bounds = array<i64: 1, 8, 32>}, {transform_indices = @transform_23, window_bounds = array<i64: 1, 8, 32>}]} {
    %c0 = arith.constant 0 : index
    %c0_0 = arith.constant 0 : index
    %c0_1 = arith.constant 0 : index
    %0 = vector.load %arg1[%c0, %c0_0, %c0_1] : memref<1x8x32xf32, #tpu.memory_space<vmem>>, vector<1x8x32xf32>
    %1 = vector.shape_cast %0 : vector<1x8x32xf32> to vector<8x32xf32>
    %c0_2 = arith.constant 0 : index
    %c0_3 = arith.constant 0 : index
    %c0_4 = arith.constant 0 : index
    %2 = vector.load %arg24[%c0_2, %c0_3, %c0_4] : memref<1x8x32xf32, #tpu.memory_space<vmem>>, vector<1x8x32xf32>
    %3 = vector.shape_cast %2 : vector<1x8x32xf32> to vector<8x32xf32>
    %4 = vector.shape_cast %1 : vector<8x32xf32> to vector<1x8x32xf32>
    tpu.vector_store %arg24[%c0_2, %c0_3, %c0_4], %4 {strides = array<i32>} : memref<1x8x32xf32, #tpu.memory_space<vmem>>, vector<1x8x32xf32>,
    %c0_5 = arith.constant 0 : index
    %c0_6 = arith.constant 0 : index
    %5 = vector.load %arg2[%c0_5, %c0_6] : memref<1x32xf32, #tpu.memory_space<vmem>>, vector<1x32xf32>
    %c0_7 = arith.constant 0 : index
    %c0_8 = arith.constant 0 : index
    %6 = vector.load %arg3[%c0_7, %c0_8] : memref<1x32xf32, #tpu.memory_space<vmem>>, vector<1x32xf32>
    %cst = arith.constant dense<0.000000e+00> : vector<8xf32>
    %7 = vector.multi_reduction <add>, %1, %cst [1] : vector<8x32xf32> to vector<8xf32>
    %8 = vector.shape_cast %7 : vector<8xf32> to vector<8x1xf32>
    %cst_9 = arith.constant 3.200000e+01 : f32
    %9 = vector.broadcast %cst_9 : f32 to vector<8x1xf32>
    %10 = arith.divf %8, %9 : vector<8x1xf32>
    %11 = vector.broadcast %10 : vector<8x1xf32> to vector<8x32xf32>
    %12 = arith.subf %1, %11 : vector<8x32xf32>
    %13 = arith.mulf %12, %12 : vector<8x32xf32>
    %cst_10 = arith.constant dense<0.000000e+00> : vector<8xf32>
    %14 = vector.multi_reduction <add>, %13, %cst_10 [1] : vector<8x32xf32> to vector<8xf32>
    %15 = vector.shape_cast %14 : vector<8xf32> to vector<8x1xf32>
    %cst_11 = arith.constant 3.200000e+01 : f32
    %16 = vector.broadcast %cst_11 : f32 to vector<8x1xf32>
    %17 = arith.divf %15, %16 : vector<8x1xf32>
    %cst_12 = arith.constant 9.99999974E-6 : f32
    %18 = vector.broadcast %cst_12 : f32 to vector<8x1xf32>
    %19 = arith.addf %17, %18 : vector<8x1xf32>
    %20 = math.rsqrt %19 : vector<8x1xf32>
    %21 = vector.broadcast %20 : vector<8x1xf32> to vector<8x32xf32>
    %22 = arith.mulf %12, %21 : vector<8x32xf32>
    %23 = vector.broadcast %5 : vector<1x32xf32> to vector<8x32xf32>
    %24 = arith.mulf %22, %23 : vector<8x32xf32>
    %25 = vector.broadcast %6 : vector<1x32xf32> to vector<8x32xf32>
    %26 = arith.addf %24, %25 : vector<8x32xf32>
    %c0_13 = arith.constant 0 : index
    %c0_14 = arith.constant 0 : index
    %27 = vector.load %arg4[%c0_13, %c0_14] : memref<32x128xf32, #tpu.memory_space<vmem>>, vector<32x128xf32>
    %cst_15 = arith.constant dense<0.000000e+00> : vector<8x128xf32>
    %28 = tpu.matmul %26, %27, %cst_15 {dimension_numbers = #tpu.dot_dimension_numbers<[1], [0], [0], [1], [0, 0, 1, 1], [], []>} : vector<8x32xf32>, vector<32x128xf32>, vector<8x128xf32> -> vector<8x128xf32>
    %29 = vector.extract_strided_slice %28 {offsets = [0, 0], sizes = [8, 64], strides = [1, 1]} : vector<8x128xf32> to vector<8x64xf32>
    %30 = vector.extract_strided_slice %28 {offsets = [0, 64], sizes = [8, 64], strides = [1, 1]} : vector<8x128xf32> to vector<8x64xf32>
    %cst_16 = arith.constant 0.000000e+00 : f32
    %31 = vector.broadcast %cst_16 : f32 to vector<8x64xf32>
    %32 = arith.subf %31, %30 : vector<8x64xf32>
    %33 = math.exp %32 : vector<8x64xf32>
    %cst_17 = arith.constant 1.000000e+00 : f32
    %34 = vector.broadcast %cst_17 : f32 to vector<8x64xf32>
    %35 = arith.addf %34, %33 : vector<8x64xf32>
    %cst_18 = arith.constant 1.000000e+00 : f32
    %36 = vector.broadcast %cst_18 : f32 to vector<8x64xf32>
    %37 = arith.divf %36, %35 : vector<8x64xf32>
    %38 = arith.mulf %30, %37 : vector<8x64xf32>
    %cst_19 = arith.constant 0.000000e+00 : f32
    %39 = vector.broadcast %cst_19 : f32 to vector<14x64xf32>
    %c0_20 = arith.constant 0 : index
    %c0_21 = arith.constant 0 : index
    %40 = vector.load %arg25[%c0_20, %c0_21] : memref<14x64xf32, #tpu.memory_space<vmem>>, vector<14x64xf32>
    tpu.vector_store %arg25[%c0_20, %c0_21], %39 {strides = array<i32>} : memref<14x64xf32, #tpu.memory_space<vmem>>, vector<14x64xf32>,
    %c3 = arith.constant 3 : index
    %c0_22 = arith.constant 0 : index
    %41 = vector.load %arg25[%c3, %c0_22] : memref<14x64xf32, #tpu.memory_space<vmem>>, vector<8x64xf32>
    tpu.vector_store %arg25[%c3, %c0_22], %29 {strides = array<i32>} : memref<14x64xf32, #tpu.memory_space<vmem>>, vector<8x64xf32>,
    %c0_23 = arith.constant 0 : index
    %c0_24 = arith.constant 0 : index
    %42 = vector.load %arg10[%c0_23, %c0_24] : memref<1x64xf32, #tpu.memory_space<vmem>>, vector<1x64xf32>
    %c0_25 = arith.constant 0 : index
    %c0_26 = arith.constant 0 : index
    %43 = vector.load %arg25[%c0_25, %c0_26] : memref<14x64xf32, #tpu.memory_space<vmem>>, vector<8x64xf32>
    %c0_27 = arith.constant 0 : index
    %c0_28 = arith.constant 0 : index
    %44 = vector.load %arg9[%c0_27, %c0_28] : memref<4x64xf32, #tpu.memory_space<vmem>>, vector<1x64xf32>
    %45 = vector.broadcast %44 : vector<1x64xf32> to vector<8x64xf32>
    %46 = arith.mulf %43, %45 : vector<8x64xf32>
    %47 = vector.broadcast %42 : vector<1x64xf32> to vector<8x64xf32>
    %48 = arith.addf %47, %46 : vector<8x64xf32>
    %c1 = arith.constant 1 : index
    %c0_29 = arith.constant 0 : index
    %49 = vector.load %arg25[%c1, %c0_29] : memref<14x64xf32, #tpu.memory_space<vmem>>, vector<8x64xf32>
    %c1_30 = arith.constant 1 : index
    %c0_31 = arith.constant 0 : index
    %50 = vector.load %arg9[%c1_30, %c0_31] : memref<4x64xf32, #tpu.memory_space<vmem>>, vector<1x64xf32>
    %51 = vector.broadcast %50 : vector<1x64xf32> to vector<8x64xf32>
    %52 = arith.mulf %49, %51 : vector<8x64xf32>
    %53 = arith.addf %48, %52 : vector<8x64xf32>
    %c2 = arith.constant 2 : index
    %c0_32 = arith.constant 0 : index
    %54 = vector.load %arg25[%c2, %c0_32] : memref<14x64xf32, #tpu.memory_space<vmem>>, vector<8x64xf32>
    %c2_33 = arith.constant 2 : index
    %c0_34 = arith.constant 0 : index
    %55 = vector.load %arg9[%c2_33, %c0_34] : memref<4x64xf32, #tpu.memory_space<vmem>>, vector<1x64xf32>
    %56 = vector.broadcast %55 : vector<1x64xf32> to vector<8x64xf32>
    %57 = arith.mulf %54, %56 : vector<8x64xf32>
    %58 = arith.addf %53, %57 : vector<8x64xf32>
    %c3_35 = arith.constant 3 : index
    %c0_36 = arith.constant 0 : index
    %59 = vector.load %arg25[%c3_35, %c0_36] : memref<14x64xf32, #tpu.memory_space<vmem>>, vector<8x64xf32>
    %c3_37 = arith.constant 3 : index
    %c0_38 = arith.constant 0 : index
    %60 = vector.load %arg9[%c3_37, %c0_38] : memref<4x64xf32, #tpu.memory_space<vmem>>, vector<1x64xf32>
    %61 = vector.broadcast %60 : vector<1x64xf32> to vector<8x64xf32>
    %62 = arith.mulf %59, %61 : vector<8x64xf32>
    %63 = arith.addf %58, %62 : vector<8x64xf32>
    %cst_39 = arith.constant 0.000000e+00 : f32
    %64 = vector.broadcast %cst_39 : f32 to vector<8x64xf32>
    %65 = arith.subf %64, %63 : vector<8x64xf32>
    %66 = math.exp %65 : vector<8x64xf32>
    %cst_40 = arith.constant 1.000000e+00 : f32
    %67 = vector.broadcast %cst_40 : f32 to vector<8x64xf32>
    %68 = arith.addf %67, %66 : vector<8x64xf32>
    %cst_41 = arith.constant 1.000000e+00 : f32
    %69 = vector.broadcast %cst_41 : f32 to vector<8x64xf32>
    %70 = arith.divf %69, %68 : vector<8x64xf32>
    %71 = arith.mulf %63, %70 : vector<8x64xf32>
    %c0_42 = arith.constant 0 : index
    %c0_43 = arith.constant 0 : index
    %72 = vector.load %arg11[%c0_42, %c0_43] : memref<64x18xf32, #tpu.memory_space<vmem>>, vector<64x18xf32>
    %cst_44 = arith.constant dense<0.000000e+00> : vector<8x18xf32>
    %73 = tpu.matmul %71, %72, %cst_44 {dimension_numbers = #tpu.dot_dimension_numbers<[1], [0], [0], [1], [0, 0, 1, 1], [], []>} : vector<8x64xf32>, vector<64x18xf32>, vector<8x18xf32> -> vector<8x18xf32>
    %74 = vector.extract_strided_slice %73 {offsets = [0, 0], sizes = [8, 2], strides = [1, 1]} : vector<8x18xf32> to vector<8x2xf32>
    %c0_45 = arith.constant 0 : index
    %c0_46 = arith.constant 0 : index
    %75 = vector.load %arg12[%c0_45, %c0_46] : memref<2x64xf32, #tpu.memory_space<vmem>>, vector<2x64xf32>
    %cst_47 = arith.constant dense<0.000000e+00> : vector<8x64xf32>
    %76 = tpu.matmul %74, %75, %cst_47 {dimension_numbers = #tpu.dot_dimension_numbers<[1], [0], [0], [1], [0, 0, 1, 1], [], []>} : vector<8x2xf32>, vector<2x64xf32>, vector<8x64xf32> -> vector<8x64xf32>
    %c0_48 = arith.constant 0 : index
    %c0_49 = arith.constant 0 : index
    %77 = vector.load %arg13[%c0_48, %c0_49] : memref<1x64xf32, #tpu.memory_space<vmem>>, vector<1x64xf32>
    %78 = vector.broadcast %77 : vector<1x64xf32> to vector<8x64xf32>
    %79 = arith.addf %76, %78 : vector<8x64xf32>
    %cst_50 = arith.constant 2.000000e+01 : f32
    %80 = vector.broadcast %cst_50 : f32 to vector<8x64xf32>
    %81 = arith.cmpf ogt, %79, %80 : vector<8x64xf32>
    %cst_51 = arith.constant 2.000000e+01 : f32
    %82 = vector.broadcast %cst_51 : f32 to vector<8x64xf32>
    %83 = arith.minimumf %79, %82 : vector<8x64xf32>
    %84 = math.exp %83 : vector<8x64xf32>
    %cst_52 = arith.constant 1.000000e+00 : f32
    %85 = vector.broadcast %cst_52 : f32 to vector<8x64xf32>
    %86 = arith.addf %85, %84 : vector<8x64xf32>
    %87 = math.log %86 : vector<8x64xf32>
    %88 = arith.select %81, %79, %87 : vector<8x64xi1>, vector<8x64xf32>
    %89 = vector.extract_strided_slice %73 {offsets = [0, 2], sizes = [8, 8], strides = [1, 1]} : vector<8x18xf32> to vector<8x8xf32>
    %90 = vector.extract_strided_slice %73 {offsets = [0, 10], sizes = [8, 8], strides = [1, 1]} : vector<8x18xf32> to vector<8x8xf32>
    %c0_53 = arith.constant 0 : index
    %c0_54 = arith.constant 0 : index
    %91 = vector.load %arg7[%c0_53, %c0_54] : memref<64x512xf32, #tpu.memory_space<vmem>>, vector<64x512xf32>
    %cst_55 = arith.constant dense<0.000000e+00> : vector<8x512xf32>
    %92 = tpu.matmul %88, %91, %cst_55 {dimension_numbers = #tpu.dot_dimension_numbers<[1], [0], [0], [1], [0, 0, 1, 1], [], []>} : vector<8x64xf32>, vector<64x512xf32>, vector<8x512xf32> -> vector<8x512xf32>
    %c0_56 = arith.constant 0 : index
    %c0_57 = arith.constant 0 : index
    %93 = vector.load %arg14[%c0_56, %c0_57] : memref<1x512xf32, #tpu.memory_space<vmem>>, vector<1x512xf32>
    %94 = vector.broadcast %93 : vector<1x512xf32> to vector<8x512xf32>
    %95 = arith.mulf %92, %94 : vector<8x512xf32>
    %96 = math.exp %95 : vector<8x512xf32>
    %97 = arith.mulf %88, %71 : vector<8x64xf32>
    %c0_58 = arith.constant 0 : index
    %c0_59 = arith.constant 0 : index
    %98 = vector.load %arg7[%c0_58, %c0_59] : memref<64x512xf32, #tpu.memory_space<vmem>>, vector<64x512xf32>
    %cst_60 = arith.constant dense<0.000000e+00> : vector<8x512xf32>
    %99 = tpu.matmul %97, %98, %cst_60 {dimension_numbers = #tpu.dot_dimension_numbers<[1], [0], [0], [1], [0, 0, 1, 1], [], []>} : vector<8x64xf32>, vector<64x512xf32>, vector<8x512xf32> -> vector<8x512xf32>
    %c0_61 = arith.constant 0 : index
    %c0_62 = arith.constant 0 : index
    %100 = vector.load %arg6[%c0_61, %c0_62] : memref<8x512xf32, #tpu.memory_space<vmem>>, vector<8x512xf32>
    %cst_63 = arith.constant dense<0.000000e+00> : vector<8x512xf32>
    %101 = tpu.matmul %89, %100, %cst_63 {dimension_numbers = #tpu.dot_dimension_numbers<[1], [0], [0], [1], [0, 0, 1, 1], [], []>} : vector<8x8xf32>, vector<8x512xf32>, vector<8x512xf32> -> vector<8x512xf32>
    %102 = arith.mulf %99, %101 : vector<8x512xf32>
    %cst_64 = arith.constant 1.000000e+00 : f32
    %103 = vector.broadcast %cst_64 : f32 to vector<1x512xf32>
    %104 = vector.extract_strided_slice %96 {offsets = [0, 0], sizes = [7, 512], strides = [1, 1]} : vector<8x512xf32> to vector<7x512xf32>
    %105 = tpu.concatenate %103, %104 in 0 : vector<1x512xf32>, vector<7x512xf32> -> vector<8x512xf32>
    %cst_65 = arith.constant 0.000000e+00 : f32
    %106 = vector.broadcast %cst_65 : f32 to vector<1x512xf32>
    %107 = vector.extract_strided_slice %102 {offsets = [0, 0], sizes = [7, 512], strides = [1, 1]} : vector<8x512xf32> to vector<7x512xf32>
    %108 = tpu.concatenate %106, %107 in 0 : vector<1x512xf32>, vector<7x512xf32> -> vector<8x512xf32>
    %109 = arith.mulf %96, %108 : vector<8x512xf32>
    %110 = arith.addf %109, %102 : vector<8x512xf32>
    %111 = arith.mulf %96, %105 : vector<8x512xf32>
    %cst_66 = arith.constant 1.000000e+00 : f32
    %112 = vector.broadcast %cst_66 : f32 to vector<2x512xf32>
    %113 = vector.extract_strided_slice %111 {offsets = [0, 0], sizes = [6, 512], strides = [1, 1]} : vector<8x512xf32> to vector<6x512xf32>
    %114 = tpu.concatenate %112, %113 in 0 : vector<2x512xf32>, vector<6x512xf32> -> vector<8x512xf32>
    %cst_67 = arith.constant 0.000000e+00 : f32
    %115 = vector.broadcast %cst_67 : f32 to vector<2x512xf32>
    %116 = vector.extract_strided_slice %110 {offsets = [0, 0], sizes = [6, 512], strides = [1, 1]} : vector<8x512xf32> to vector<6x512xf32>
    %117 = tpu.concatenate %115, %116 in 0 : vector<2x512xf32>, vector<6x512xf32> -> vector<8x512xf32>
    %118 = arith.mulf %111, %117 : vector<8x512xf32>
    %119 = arith.addf %118, %110 : vector<8x512xf32>
    %120 = arith.mulf %111, %114 : vector<8x512xf32>
    %cst_68 = arith.constant 0.000000e+00 : f32
    %121 = vector.broadcast %cst_68 : f32 to vector<4x512xf32>
    %122 = vector.extract_strided_slice %119 {offsets = [0, 0], sizes = [4, 512], strides = [1, 1]} : vector<8x512xf32> to vector<4x512xf32>
    %123 = tpu.concatenate %121, %122 in 0 : vector<4x512xf32>, vector<4x512xf32> -> vector<8x512xf32>
    %124 = arith.mulf %120, %123 : vector<8x512xf32>
    %125 = arith.addf %124, %119 : vector<8x512xf32>
    %c0_69 = arith.constant 0 : index
    %c0_70 = arith.constant 0 : index
    %126 = vector.load %arg6[%c0_69, %c0_70] : memref<8x512xf32, #tpu.memory_space<vmem>>, vector<8x512xf32>
    %cst_71 = arith.constant dense<0.000000e+00> : vector<8x512xf32>
    %127 = tpu.matmul %90, %126, %cst_71 {dimension_numbers = #tpu.dot_dimension_numbers<[1], [0], [0], [1], [0, 0, 1, 1], [], []>} : vector<8x8xf32>, vector<8x512xf32>, vector<8x512xf32> -> vector<8x512xf32>
    %128 = arith.mulf %125, %127 : vector<8x512xf32>
    %c0_72 = arith.constant 0 : index
    %c0_73 = arith.constant 0 : index
    %129 = vector.load %arg8[%c0_72, %c0_73] : memref<512x64xf32, #tpu.memory_space<vmem>>, vector<512x64xf32>
    %cst_74 = arith.constant dense<0.000000e+00> : vector<8x64xf32>
    %130 = tpu.matmul %128, %129, %cst_74 {dimension_numbers = #tpu.dot_dimension_numbers<[1], [0], [0], [1], [0, 0, 1, 1], [], []>} : vector<8x512xf32>, vector<512x64xf32>, vector<8x64xf32> -> vector<8x64xf32>
    %c0_75 = arith.constant 0 : index
    %c0_76 = arith.constant 0 : index
    %131 = vector.load %arg15[%c0_75, %c0_76] : memref<1x64xf32, #tpu.memory_space<vmem>>, vector<1x64xf32>
    %132 = vector.broadcast %131 : vector<1x64xf32> to vector<8x64xf32>
    %133 = arith.mulf %71, %132 : vector<8x64xf32>
    %134 = arith.addf %130, %133 : vector<8x64xf32>
    %c0_77 = arith.constant 0 : index
    %c0_78 = arith.constant 0 : index
    %135 = vector.load %arg17[%c0_77, %c0_78] : memref<1x64xf32, #tpu.memory_space<vmem>>, vector<1x64xf32>
    %c3_79 = arith.constant 3 : index
    %c0_80 = arith.constant 0 : index
    %136 = vector.load %arg25[%c3_79, %c0_80] : memref<14x64xf32, #tpu.memory_space<vmem>>, vector<8x64xf32>
    %c3_81 = arith.constant 3 : index
    %c0_82 = arith.constant 0 : index
    %137 = vector.load %arg16[%c3_81, %c0_82] : memref<4x64xf32, #tpu.memory_space<vmem>>, vector<1x64xf32>
    %138 = vector.broadcast %137 : vector<1x64xf32> to vector<8x64xf32>
    %139 = arith.mulf %136, %138 : vector<8x64xf32>
    %140 = vector.broadcast %135 : vector<1x64xf32> to vector<8x64xf32>
    %141 = arith.addf %140, %139 : vector<8x64xf32>
    %c4 = arith.constant 4 : index
    %c0_83 = arith.constant 0 : index
    %142 = vector.load %arg25[%c4, %c0_83] : memref<14x64xf32, #tpu.memory_space<vmem>>, vector<8x64xf32>
    %c2_84 = arith.constant 2 : index
    %c0_85 = arith.constant 0 : index
    %143 = vector.load %arg16[%c2_84, %c0_85] : memref<4x64xf32, #tpu.memory_space<vmem>>, vector<1x64xf32>
    %144 = vector.broadcast %143 : vector<1x64xf32> to vector<8x64xf32>
    %145 = arith.mulf %142, %144 : vector<8x64xf32>
    %146 = arith.addf %141, %145 : vector<8x64xf32>
    %c5 = arith.constant 5 : index
    %c0_86 = arith.constant 0 : index
    %147 = vector.load %arg25[%c5, %c0_86] : memref<14x64xf32, #tpu.memory_space<vmem>>, vector<8x64xf32>
    %c1_87 = arith.constant 1 : index
    %c0_88 = arith.constant 0 : index
    %148 = vector.load %arg16[%c1_87, %c0_88] : memref<4x64xf32, #tpu.memory_space<vmem>>, vector<1x64xf32>
    %149 = vector.broadcast %148 : vector<1x64xf32> to vector<8x64xf32>
    %150 = arith.mulf %147, %149 : vector<8x64xf32>
    %151 = arith.addf %146, %150 : vector<8x64xf32>
    %c6 = arith.constant 6 : index
    %c0_89 = arith.constant 0 : index
    %152 = vector.load %arg25[%c6, %c0_89] : memref<14x64xf32, #tpu.memory_space<vmem>>, vector<8x64xf32>
    %c0_90 = arith.constant 0 : index
    %c0_91 = arith.constant 0 : index
    %153 = vector.load %arg16[%c0_90, %c0_91] : memref<4x64xf32, #tpu.memory_space<vmem>>, vector<1x64xf32>
    %154 = vector.broadcast %153 : vector<1x64xf32> to vector<8x64xf32>
    %155 = arith.mulf %152, %154 : vector<8x64xf32>
    %156 = arith.addf %151, %155 : vector<8x64xf32>
    %cst_92 = arith.constant 0.000000e+00 : f32
    %157 = vector.broadcast %cst_92 : f32 to vector<8x64xf32>
    %158 = arith.subf %157, %156 : vector<8x64xf32>
    %159 = math.exp %158 : vector<8x64xf32>
    %cst_93 = arith.constant 1.000000e+00 : f32
    %160 = vector.broadcast %cst_93 : f32 to vector<8x64xf32>
    %161 = arith.addf %160, %159 : vector<8x64xf32>
    %cst_94 = arith.constant 1.000000e+00 : f32
    %162 = vector.broadcast %cst_94 : f32 to vector<8x64xf32>
    %163 = arith.divf %162, %161 : vector<8x64xf32>
    %164 = arith.mulf %156, %163 : vector<8x64xf32>
    %c0_95 = arith.constant 0 : index
    %c0_96 = arith.constant 0 : index
    %165 = vector.load %arg18[%c0_95, %c0_96] : memref<64x18xf32, #tpu.memory_space<vmem>>, vector<64x18xf32>
    %cst_97 = arith.constant dense<0.000000e+00> : vector<8x18xf32>
    %166 = tpu.matmul %164, %165, %cst_97 {dimension_numbers = #tpu.dot_dimension_numbers<[1], [0], [0], [1], [0, 0, 1, 1], [], []>} : vector<8x64xf32>, vector<64x18xf32>, vector<8x18xf32> -> vector<8x18xf32>
    %167 = vector.extract_strided_slice %166 {offsets = [0, 0], sizes = [8, 2], strides = [1, 1]} : vector<8x18xf32> to vector<8x2xf32>
    %c0_98 = arith.constant 0 : index
    %c0_99 = arith.constant 0 : index
    %168 = vector.load %arg19[%c0_98, %c0_99] : memref<2x64xf32, #tpu.memory_space<vmem>>, vector<2x64xf32>
    %cst_100 = arith.constant dense<0.000000e+00> : vector<8x64xf32>
    %169 = tpu.matmul %167, %168, %cst_100 {dimension_numbers = #tpu.dot_dimension_numbers<[1], [0], [0], [1], [0, 0, 1, 1], [], []>} : vector<8x2xf32>, vector<2x64xf32>, vector<8x64xf32> -> vector<8x64xf32>
    %c0_101 = arith.constant 0 : index
    %c0_102 = arith.constant 0 : index
    %170 = vector.load %arg20[%c0_101, %c0_102] : memref<1x64xf32, #tpu.memory_space<vmem>>, vector<1x64xf32>
    %171 = vector.broadcast %170 : vector<1x64xf32> to vector<8x64xf32>
    %172 = arith.addf %169, %171 : vector<8x64xf32>
    %cst_103 = arith.constant 2.000000e+01 : f32
    %173 = vector.broadcast %cst_103 : f32 to vector<8x64xf32>
    %174 = arith.cmpf ogt, %172, %173 : vector<8x64xf32>
    %cst_104 = arith.constant 2.000000e+01 : f32
    %175 = vector.broadcast %cst_104 : f32 to vector<8x64xf32>
    %176 = arith.minimumf %172, %175 : vector<8x64xf32>
    %177 = math.exp %176 : vector<8x64xf32>
    %cst_105 = arith.constant 1.000000e+00 : f32
    %178 = vector.broadcast %cst_105 : f32 to vector<8x64xf32>
    %179 = arith.addf %178, %177 : vector<8x64xf32>
    %180 = math.log %179 : vector<8x64xf32>
    %181 = arith.select %174, %172, %180 : vector<8x64xi1>, vector<8x64xf32>
    %182 = vector.extract_strided_slice %166 {offsets = [0, 2], sizes = [8, 8], strides = [1, 1]} : vector<8x18xf32> to vector<8x8xf32>
    %183 = vector.extract_strided_slice %166 {offsets = [0, 10], sizes = [8, 8], strides = [1, 1]} : vector<8x18xf32> to vector<8x8xf32>
    %c0_106 = arith.constant 0 : index
    %c0_107 = arith.constant 0 : index
    %184 = vector.load %arg7[%c0_106, %c0_107] : memref<64x512xf32, #tpu.memory_space<vmem>>, vector<64x512xf32>
    %cst_108 = arith.constant dense<0.000000e+00> : vector<8x512xf32>
    %185 = tpu.matmul %181, %184, %cst_108 {dimension_numbers = #tpu.dot_dimension_numbers<[1], [0], [0], [1], [0, 0, 1, 1], [], []>} : vector<8x64xf32>, vector<64x512xf32>, vector<8x512xf32> -> vector<8x512xf32>
    %c0_109 = arith.constant 0 : index
    %c0_110 = arith.constant 0 : index
    %186 = vector.load %arg21[%c0_109, %c0_110] : memref<1x512xf32, #tpu.memory_space<vmem>>, vector<1x512xf32>
    %187 = vector.broadcast %186 : vector<1x512xf32> to vector<8x512xf32>
    %188 = arith.mulf %185, %187 : vector<8x512xf32>
    %189 = math.exp %188 : vector<8x512xf32>
    %190 = arith.mulf %181, %164 : vector<8x64xf32>
    %c0_111 = arith.constant 0 : index
    %c0_112 = arith.constant 0 : index
    %191 = vector.load %arg7[%c0_111, %c0_112] : memref<64x512xf32, #tpu.memory_space<vmem>>, vector<64x512xf32>
    %cst_113 = arith.constant dense<0.000000e+00> : vector<8x512xf32>
    %192 = tpu.matmul %190, %191, %cst_113 {dimension_numbers = #tpu.dot_dimension_numbers<[1], [0], [0], [1], [0, 0, 1, 1], [], []>} : vector<8x64xf32>, vector<64x512xf32>, vector<8x512xf32> -> vector<8x512xf32>
    %c0_114 = arith.constant 0 : index
    %c0_115 = arith.constant 0 : index
    %193 = vector.load %arg6[%c0_114, %c0_115] : memref<8x512xf32, #tpu.memory_space<vmem>>, vector<8x512xf32>
    %cst_116 = arith.constant dense<0.000000e+00> : vector<8x512xf32>
    %194 = tpu.matmul %182, %193, %cst_116 {dimension_numbers = #tpu.dot_dimension_numbers<[1], [0], [0], [1], [0, 0, 1, 1], [], []>} : vector<8x8xf32>, vector<8x512xf32>, vector<8x512xf32> -> vector<8x512xf32>
    %195 = arith.mulf %192, %194 : vector<8x512xf32>
    %cst_117 = arith.constant 1.000000e+00 : f32
    %196 = vector.broadcast %cst_117 : f32 to vector<1x512xf32>
    %197 = vector.extract_strided_slice %189 {offsets = [1, 0], sizes = [7, 512], strides = [1, 1]} : vector<8x512xf32> to vector<7x512xf32>
    %198 = tpu.concatenate %197, %196 in 0 : vector<7x512xf32>, vector<1x512xf32> -> vector<8x512xf32>
    %cst_118 = arith.constant 0.000000e+00 : f32
    %199 = vector.broadcast %cst_118 : f32 to vector<1x512xf32>
    %200 = vector.extract_strided_slice %195 {offsets = [1, 0], sizes = [7, 512], strides = [1, 1]} : vector<8x512xf32> to vector<7x512xf32>
    %201 = tpu.concatenate %200, %199 in 0 : vector<7x512xf32>, vector<1x512xf32> -> vector<8x512xf32>
    %202 = arith.mulf %189, %201 : vector<8x512xf32>
    %203 = arith.addf %202, %195 : vector<8x512xf32>
    %204 = arith.mulf %189, %198 : vector<8x512xf32>
    %cst_119 = arith.constant 1.000000e+00 : f32
    %205 = vector.broadcast %cst_119 : f32 to vector<2x512xf32>
    %206 = vector.extract_strided_slice %204 {offsets = [2, 0], sizes = [6, 512], strides = [1, 1]} : vector<8x512xf32> to vector<6x512xf32>
    %207 = tpu.concatenate %206, %205 in 0 : vector<6x512xf32>, vector<2x512xf32> -> vector<8x512xf32>
    %cst_120 = arith.constant 0.000000e+00 : f32
    %208 = vector.broadcast %cst_120 : f32 to vector<2x512xf32>
    %209 = vector.extract_strided_slice %203 {offsets = [2, 0], sizes = [6, 512], strides = [1, 1]} : vector<8x512xf32> to vector<6x512xf32>
    %210 = tpu.concatenate %209, %208 in 0 : vector<6x512xf32>, vector<2x512xf32> -> vector<8x512xf32>
    %211 = arith.mulf %204, %210 : vector<8x512xf32>
    %212 = arith.addf %211, %203 : vector<8x512xf32>
    %213 = arith.mulf %204, %207 : vector<8x512xf32>
    %cst_121 = arith.constant 0.000000e+00 : f32
    %214 = vector.broadcast %cst_121 : f32 to vector<4x512xf32>
    %215 = vector.extract_strided_slice %212 {offsets = [4, 0], sizes = [4, 512], strides = [1, 1]} : vector<8x512xf32> to vector<4x512xf32>
    %216 = tpu.concatenate %215, %214 in 0 : vector<4x512xf32>, vector<4x512xf32> -> vector<8x512xf32>
    %217 = arith.mulf %213, %216 : vector<8x512xf32>
    %218 = arith.addf %217, %212 : vector<8x512xf32>
    %c0_122 = arith.constant 0 : index
    %c0_123 = arith.constant 0 : index
    %219 = vector.load %arg6[%c0_122, %c0_123] : memref<8x512xf32, #tpu.memory_space<vmem>>, vector<8x512xf32>
    %cst_124 = arith.constant dense<0.000000e+00> : vector<8x512xf32>
    %220 = tpu.matmul %183, %219, %cst_124 {dimension_numbers = #tpu.dot_dimension_numbers<[1], [0], [0], [1], [0, 0, 1, 1], [], []>} : vector<8x8xf32>, vector<8x512xf32>, vector<8x512xf32> -> vector<8x512xf32>
    %221 = arith.mulf %218, %220 : vector<8x512xf32>
    %c0_125 = arith.constant 0 : index
    %c0_126 = arith.constant 0 : index
    %222 = vector.load %arg8[%c0_125, %c0_126] : memref<512x64xf32, #tpu.memory_space<vmem>>, vector<512x64xf32>
    %cst_127 = arith.constant dense<0.000000e+00> : vector<8x64xf32>
    %223 = tpu.matmul %221, %222, %cst_127 {dimension_numbers = #tpu.dot_dimension_numbers<[1], [0], [0], [1], [0, 0, 1, 1], [], []>} : vector<8x512xf32>, vector<512x64xf32>, vector<8x64xf32> -> vector<8x64xf32>
    %c0_128 = arith.constant 0 : index
    %c0_129 = arith.constant 0 : index
    %224 = vector.load %arg22[%c0_128, %c0_129] : memref<1x64xf32, #tpu.memory_space<vmem>>, vector<1x64xf32>
    %225 = vector.broadcast %224 : vector<1x64xf32> to vector<8x64xf32>
    %226 = arith.mulf %164, %225 : vector<8x64xf32>
    %227 = arith.addf %223, %226 : vector<8x64xf32>
    %228 = arith.addf %134, %227 : vector<8x64xf32>
    %229 = arith.mulf %228, %38 : vector<8x64xf32>
    %c0_130 = arith.constant 0 : index
    %c0_131 = arith.constant 0 : index
    %230 = vector.load %arg5[%c0_130, %c0_131] : memref<64x32xf32, #tpu.memory_space<vmem>>, vector<64x32xf32>
    %cst_132 = arith.constant dense<0.000000e+00> : vector<8x32xf32>
    %231 = tpu.matmul %229, %230, %cst_132 {dimension_numbers = #tpu.dot_dimension_numbers<[1], [0], [0], [1], [0, 0, 1, 1], [], []>} : vector<8x64xf32>, vector<64x32xf32>, vector<8x32xf32> -> vector<8x32xf32>
    %c0_133 = arith.constant 0 : index
    %c0_134 = arith.constant 0 : index
    %c0_135 = arith.constant 0 : index
    %232 = vector.load %arg23[%c0_133, %c0_134, %c0_135] : memref<1x8x32xf32, #tpu.memory_space<vmem>>, vector<1x8x32xf32>
    %233 = vector.shape_cast %232 : vector<1x8x32xf32> to vector<8x32xf32>
    %234 = vector.shape_cast %231 : vector<8x32xf32> to vector<1x8x32xf32>
    tpu.vector_store %arg23[%c0_133, %c0_134, %c0_135], %234 {strides = array<i32>} : memref<1x8x32xf32, #tpu.memory_space<vmem>>, vector<1x8x32xf32>,
    return
  }
  func.func @transform_0(%arg0: i32) -> (i32, i32, i32) {
    %c0_i32 = arith.constant 0 : i32
    %c0_i32_0 = arith.constant 0 : i32
    %c0_i32_1 = arith.constant 0 : i32
    return %arg0, %c0_i32, %c0_i32_0 : i32, i32, i32
  }
  func.func @transform_1(%arg0: i32) -> (i32, i32) {
    %c0_i32 = arith.constant 0 : i32
    %c0_i32_0 = arith.constant 0 : i32
    %c0_i32_1 = arith.constant 0 : i32
    return %c0_i32, %c0_i32_0 : i32, i32
  }
  func.func @transform_2(%arg0: i32) -> (i32, i32) {
    %c0_i32 = arith.constant 0 : i32
    %c0_i32_0 = arith.constant 0 : i32
    %c0_i32_1 = arith.constant 0 : i32
    return %c0_i32, %c0_i32_0 : i32, i32
  }
  func.func @transform_3(%arg0: i32) -> (i32, i32) {
    %c0_i32 = arith.constant 0 : i32
    %c0_i32_0 = arith.constant 0 : i32
    %c0_i32_1 = arith.constant 0 : i32
    return %c0_i32, %c0_i32_0 : i32, i32
  }
  func.func @transform_4(%arg0: i32) -> (i32, i32) {
    %c0_i32 = arith.constant 0 : i32
    %c0_i32_0 = arith.constant 0 : i32
    %c0_i32_1 = arith.constant 0 : i32
    return %c0_i32, %c0_i32_0 : i32, i32
  }
  func.func @transform_5(%arg0: i32) -> (i32, i32) {
    %c0_i32 = arith.constant 0 : i32
    %c0_i32_0 = arith.constant 0 : i32
    %c0_i32_1 = arith.constant 0 : i32
    return %c0_i32, %c0_i32_0 : i32, i32
  }
  func.func @transform_6(%arg0: i32) -> (i32, i32) {
    %c0_i32 = arith.constant 0 : i32
    %c0_i32_0 = arith.constant 0 : i32
    %c0_i32_1 = arith.constant 0 : i32
    return %c0_i32, %c0_i32_0 : i32, i32
  }
  func.func @transform_7(%arg0: i32) -> (i32, i32) {
    %c0_i32 = arith.constant 0 : i32
    %c0_i32_0 = arith.constant 0 : i32
    %c0_i32_1 = arith.constant 0 : i32
    return %c0_i32, %c0_i32_0 : i32, i32
  }
  func.func @transform_8(%arg0: i32) -> (i32, i32) {
    %c0_i32 = arith.constant 0 : i32
    %c0_i32_0 = arith.constant 0 : i32
    %c0_i32_1 = arith.constant 0 : i32
    return %c0_i32, %c0_i32_0 : i32, i32
  }
  func.func @transform_9(%arg0: i32) -> (i32, i32) {
    %c0_i32 = arith.constant 0 : i32
    %c0_i32_0 = arith.constant 0 : i32
    %c0_i32_1 = arith.constant 0 : i32
    return %c0_i32, %c0_i32_0 : i32, i32
  }
  func.func @transform_10(%arg0: i32) -> (i32, i32) {
    %c0_i32 = arith.constant 0 : i32
    %c0_i32_0 = arith.constant 0 : i32
    %c0_i32_1 = arith.constant 0 : i32
    return %c0_i32, %c0_i32_0 : i32, i32
  }
  func.func @transform_11(%arg0: i32) -> (i32, i32) {
    %c0_i32 = arith.constant 0 : i32
    %c0_i32_0 = arith.constant 0 : i32
    %c0_i32_1 = arith.constant 0 : i32
    return %c0_i32, %c0_i32_0 : i32, i32
  }
  func.func @transform_12(%arg0: i32) -> (i32, i32) {
    %c0_i32 = arith.constant 0 : i32
    %c0_i32_0 = arith.constant 0 : i32
    %c0_i32_1 = arith.constant 0 : i32
    return %c0_i32, %c0_i32_0 : i32, i32
  }
  func.func @transform_13(%arg0: i32) -> (i32, i32) {
    %c0_i32 = arith.constant 0 : i32
    %c0_i32_0 = arith.constant 0 : i32
    %c0_i32_1 = arith.constant 0 : i32
    return %c0_i32, %c0_i32_0 : i32, i32
  }
  func.func @transform_14(%arg0: i32) -> (i32, i32) {
    %c0_i32 = arith.constant 0 : i32
    %c0_i32_0 = arith.constant 0 : i32
    %c0_i32_1 = arith.constant 0 : i32
    return %c0_i32, %c0_i32_0 : i32, i32
  }
  func.func @transform_15(%arg0: i32) -> (i32, i32) {
    %c0_i32 = arith.constant 0 : i32
    %c0_i32_0 = arith.constant 0 : i32
    %c0_i32_1 = arith.constant 0 : i32
    return %c0_i32, %c0_i32_0 : i32, i32
  }
  func.func @transform_16(%arg0: i32) -> (i32, i32) {
    %c0_i32 = arith.constant 0 : i32
    %c0_i32_0 = arith.constant 0 : i32
    %c0_i32_1 = arith.constant 0 : i32
    return %c0_i32, %c0_i32_0 : i32, i32
  }
  func.func @transform_17(%arg0: i32) -> (i32, i32) {
    %c0_i32 = arith.constant 0 : i32
    %c0_i32_0 = arith.constant 0 : i32
    %c0_i32_1 = arith.constant 0 : i32
    return %c0_i32, %c0_i32_0 : i32, i32
  }
  func.func @transform_18(%arg0: i32) -> (i32, i32) {
    %c0_i32 = arith.constant 0 : i32
    %c0_i32_0 = arith.constant 0 : i32
    %c0_i32_1 = arith.constant 0 : i32
    return %c0_i32, %c0_i32_0 : i32, i32
  }
  func.func @transform_19(%arg0: i32) -> (i32, i32) {
    %c0_i32 = arith.constant 0 : i32
    %c0_i32_0 = arith.constant 0 : i32
    %c0_i32_1 = arith.constant 0 : i32
    return %c0_i32, %c0_i32_0 : i32, i32
  }
  func.func @transform_20(%arg0: i32) -> (i32, i32) {
    %c0_i32 = arith.constant 0 : i32
    %c0_i32_0 = arith.constant 0 : i32
    %c0_i32_1 = arith.constant 0 : i32
    return %c0_i32, %c0_i32_0 : i32, i32
  }
  func.func @transform_21(%arg0: i32) -> (i32, i32) {
    %c0_i32 = arith.constant 0 : i32
    %c0_i32_0 = arith.constant 0 : i32
    %c0_i32_1 = arith.constant 0 : i32
    return %c0_i32, %c0_i32_0 : i32, i32
  }
  func.func @transform_22(%arg0: i32) -> (i32, i32, i32) {
    %c0_i32 = arith.constant 0 : i32
    %c0_i32_0 = arith.constant 0 : i32
    %c0_i32_1 = arith.constant 0 : i32
    return %arg0, %c0_i32, %c0_i32_0 : i32, i32, i32
  }
  func.func @transform_23(%arg0: i32) -> (i32, i32, i32) {
    %c0_i32 = arith.constant 0 : i32
    %c0_i32_0 = arith.constant 0 : i32
    %c0_i32_1 = arith.constant 0 : i32
    return %arg0, %c0_i32, %c0_i32_0 : i32, i32, i32
  }
}

</mosaic_0001>

<bundles_post_ra>
// kernel: tpu_custom_call.1
= control target key start
LH: loop header
LB: loop body
LE: loop exit
PB: predicated region body
PF: predicated region fallthrough
CT: control target
= control target key end

     0   :  { %s5299_s0 = inlined_call_operand.vmem [shape: f32[2,8,32], index: 0, kind: input, shape index: {}]   ;;  %s5300_s1 = inlined_call_operand.vmem [shape: f32[1,32], index: 1, kind: input, shape index: {}]   ;;  %s5301_s2 = inlined_call_operand.vmem [shape: f32[1,32], index: 2, kind: input, shape index: {}]   ;;  %s5302_s3 = inlined_call_operand.vmem [shape: f32[32,128], index: 3, kind: input, shape index: {}]   ;;  %s5303_s4 = inlined_call_operand.vmem [shape: f32[64,32], index: 4, kind: input, shape index: {}]   ;;  %s5304_s5 = inlined_call_operand.vmem [shape: f32[8,512], index: 5, kind: input, shape index: {}]   ;;  %s5305_s6 = inlined_call_operand.vmem [shape: f32[64,512], index: 6, kind: input, shape index: {}]   ;;  %s5306_s7 = inlined_call_operand.vmem [shape: f32[512,64], index: 7, kind: input, shape index: {}]   ;;  %s5307_s8 = inlined_call_operand.vmem [shape: f32[4,64], index: 8, kind: input, shape index: {}]   ;;  %s5308_s9 = inlined_call_operand.vmem [shape: f32[1,64], index: 9, kind: input, shape index: {}]   ;;  %s5309_s10 = inlined_call_operand.vmem [shape: f32[64,18], index: 10, kind: input, shape index: {}]   ;;  %s5310_s11 = inlined_call_operand.vmem [shape: f32[2,64], index: 11, kind: input, shape index: {}]   ;;  %s5311_s12 = inlined_call_operand.vmem [shape: f32[1,64], index: 12, kind: input, shape index: {}]   ;;  %s5312_s13 = inlined_call_operand.vmem [shape: f32[1,512], index: 13, kind: input, shape index: {}]   ;;  %s5313_s14 = inlined_call_operand.vmem [shape: f32[1,64], index: 14, kind: input, shape index: {}]   ;;  %s5314_s15 = inlined_call_operand.vmem [shape: f32[4,64], index: 15, kind: input, shape index: {}]   ;;  %s5315_s16 = inlined_call_operand.vmem [shape: f32[1,64], index: 16, kind: input, shape index: {}]   ;;  %s5316_s17 = inlined_call_operand.vmem [shape: f32[64,18], index: 17, kind: input, shape index: {}]   ;;  %s5317_s18 = inlined_call_operand.vmem [shape: f32[2,64], index: 18, kind: input, shape index: {}]   ;;  %s5318_s19 = inlined_call_operand.vmem [shape: f32[1,64], index: 19, kind: input, shape index: {}]   ;;  %s5319_s20 = inlined_call_operand.vmem [shape: f32[1,512], index: 20, kind: input, shape index: {}]   ;;  %s5320_s21 = inlined_call_operand.vmem [shape: f32[1,64], index: 21, kind: input, shape index: {}]   ;;  %s5321_s22 = inlined_call_operand.hbm [shape: f32[2,8,32], index: 22, kind: output, shape index: {0}]   ;;  %s5322_s23 = inlined_call_operand.hbm [shape: f32[2,8,32], index: 23, kind: output, shape index: {1}]  }
   0x1   :  { %5376 = sst [smem:[#allocation41_spill]] %s5299_s0 }
   0x2   :  { %5377 = sst [smem:[#allocation42_spill]] %s5300_s1 }
   0x3   :  { %5378 = sst [smem:[#allocation43_spill]] %s5301_s2 }
   0x4   :  { %5379 = sst [smem:[#allocation44_spill]] %s5302_s3 }
   0x5   :  { %5380 = sst [smem:[#allocation45_spill]] %s5303_s4 }
   0x6   :  { %5381 = sst [smem:[#allocation46_spill]] %s5304_s5 }
   0x7   :  { %5382 = sst [smem:[#allocation47_spill]] %s5305_s6 }
   0x8   :  { %5383 = sst [smem:[#allocation48_spill]] %s5306_s7 }
   0x9   :  { %5384 = sst [smem:[#allocation49_spill]] %s5307_s8 }
   0xa   :  { %5385 = sst [smem:[#allocation50_spill]] %s5308_s9 }
   0xb   :  { %5386 = sst [smem:[#allocation51_spill]] %s5309_s10 }
   0xc   :  { %5387 = sst [smem:[#allocation52_spill]] %s5310_s11 }
   0xd   :  { %29 = vsyncpa [#allocation4], 0 }
   0xe   :  { %31 = vsyncpa [#allocation4 + $0x1], 0 }
   0xf   :  { %32 = vsyncpa [#allocation6], 0 }
  0x10   :  { %34 = vsyncpa [#allocation6 + $0x1], 0  ;;  %s4281_s4 = smov 0   ;;  %s4283_s30 = smov 0  }
  0x11   :  { %s4285_s24 = smov 0   ;;  %s4287_s25 = smov 0  }
  0x12 LB: > { %5388 = sst [smem:[#allocation9_spill]] %s4147_s24  ;;  %s4302_s5 = sadd.s32 4294967295, %s4151_s25   ;;  %s4151_s25 = sphi %s4287_s25, %s5474_s25   ;;  %s4147_s24 = sphi %s4285_s24, %s5476_s24   ;;  %s4143_s30 = sphi %s4283_s30, %s5478_s30   ;;  %s4139_s4 = sphi %s4281_s4, %s5477_s4  }
  0x13   : > { %s3364_s1 = sadd.s32 4294967294, %s4151_s25   ;;  %s4306_s26 = sadd.s32 1, %s4151_s25  }
  0x14   : > { %5389 = sst [smem:[#allocation10_spill]] %s4306_s26  ;;  %s514_s2 = sadd.s32 1, %s4147_s24 }
  0x15   : > { %s511_s6 = ssub.s32 %s4151_s25, %s4306_s26  ;;  %p524_p0 = scmp.ne.s32.totalorder %s4147_s24, %s4143_s30 }
  0x16   : > { %p512_p1 = scmp.eq.s32.totalorder %s511_s6, 0  ;;  %p525_p2 = scmp.eq.s32.totalorder %s4302_s5, 1 }
  0x17   : > { %p530_p3 = scmp.ne.s32.totalorder %s4143_s30, %s4139_s4  ;;  %p531_p4 = scmp.eq.s32.totalorder %s3364_s1, 1 }
  0x18   : > { %s4317_s27 = scalar_select %p512_p1, %s4147_s24, %s514_s2  }
  0x19   : > { %p4319_p5 = por %p525_p2, %p524_p0  ;;  %p4323_p6 = por %p531_p4, %p530_p3 }
  0x1a   : > { %5390 = sst [smem:[#allocation11_spill]] %s4317_s27  ;;  %p3367_p7 = scmp.ge.s32.totalorder %s4151_s25, 1 }
  0x1b   : > { %s5392_s28 = scalar_select %p4323_p6, 1, 0 }
  0x1c   : > { %p645_p8 = scmp.lt.s32.totalorder %s4151_s25, 3 }
  0x1d   : > { %5393 = sst [smem:[#allocation12_spill]] %s5392_s28 }
  0x1e   : > { %p646_p9 = pnand %p3367_p7, %p645_p8 }
  0x20   : > { %649 = sbr.rel (%p646_p9) target bundleno = 2520 (0x9d8), region = 108 }
  0x27   : > { %p713_p10 = scmp.lt.s32.totalorder %s4302_s5, 1  ;;  %vm718_vm0 = vcmask 261120   ;;  %s5394_s2 = sld [smem:[#allocation41_spill]]  ;;  %v5335_v10 = vmov 0.0|0.0   ;;  %vm4154_vm1 = vmmov 0   ;;  %v5338_v13 = vmov 0.0  }
  0x28   : > { %s5396_s24 = sld [smem:[#allocation44_spill]]  ;;  %3671 = vmatprep.subr.bf16.mxu1 %v5335_v10  ;;  %3601 = vmatprep.mubr.msk.f32.mxu1 %vm4154_vm1, %v5338_v13  ;;  %s5398_s28 = sld [smem:[#allocation42_spill]]  ;;  %vm834_vm2 = vcmask 523264   ;;  %vm836_vm3 = vcmask 521216   ;;  %vm978_vm4 = vcmask 1041408   ;;  %vm974_vm5 = vcmask 15360  }
  0x29   : > { %s714_s29 = scalar_select %p713_p10, %s4302_s5, 1  ;;  %3623 = vmatprep.subr.mxu0 %v5338_v13  ;;  %3625 = vmatprep.mubr.msk.f32.mxu0 %vm4154_vm1, %v5338_v13  ;;  %835 = vst.msk [vmem:[#allocation2] sm:$0xff] %vm834_vm2, %v5338_v13  ;;  %vm1423_vm7 = vcmask 64512   ;;  %vm1584_vm8 = vcmask 1040384   ;;  %vm1673_vm9 = vcmask 1043456   ;;  %vm2753_vm11 = vcmask 1046528  }
  0x2a   : > { %837 = vst.msk [vmem:[#allocation2 + $0x8] sm:$0x3f] %vm836_vm3, %v5338_v13  ;;  %s5400_s10 = sld [smem:[#allocation51_spill]]  ;;  %s5401_s8 = sld [smem:[#allocation49_spill]]  ;;  %vm2798_vm12 = vcmask 1045504  }
  0x2b   : > { %s3370_s3 = sshll.u32 %s714_s29, 3  ;;  %s5402_s9 = sld [smem:[#allocation50_spill]] }
  0x2c   : > { %s5403_s11 = sld [smem:[#allocation52_spill]]  ;;  %s4158_s27 = smov 64  }
  0x2d   : > { %s716_s6 = scalar_lea.vmem %s5394_s2, %s3370_s3  ;;  %s5399_s3 = sld [smem:[#allocation43_spill]] }
  0x2e   : > { %v4334_v0 = vld [vmem:[%s716_s6] sm:$0xff]  ;;  %s5397_s26 = smov %s5396_s24  ;;  %s5332_s2 = smov 126  }
  0x2f   : > { %5395 = vst [vmem:[#allocation13_spill] sm:$0xff] %v4334_v0  ;;  %v722_v1 = vsel %vm718_vm0, %v4334_v0, 0.0  ;;  %v750_v7 = vld [vmem:[%s5396_s24] sm:$0xff]  ;;  %v751_v8 = vld [vmem:[%s5397_s26 + $0x8] sm:$0xff]  ;;  %v752_v9 = vld [vmem:[%s5397_s26 + $0x10] sm:$0xff]  ;;  %s5333_s6 = smov 118  }
  0x30   : > { %723 = vadd.xlane.f32.xlu0 %v722_v1  ;;  %v3672_v11 = vpack.c.bf16 %v751_v8, %v750_v7  ;;  %v753_v12 = vld [vmem:[%s5397_s26 + $0x18] sm:$0xff]  ;;  %v3371_v19 = vld [vmem:[%s5398_s28] ss:$0 sm:$0xff]  ;;  %v886_v25 = vld [vmem:[%s5400_s10 + $0x8] sm:$0xff]  ;;  %s5404_s28 = sld [smem:[#allocation47_spill]]  ;;  %s5437_s24 = smov 126  }
  0x31   : > { %v3675_v14 = vpack.c.bf16 %v753_v12, %v752_v9  ;;  %v885_v24 = vld [vmem:[%s5400_s10] sm:$0xff]  ;;  %v887_v26 = vld [vmem:[%s5400_s10 + $0x10] sm:$0xff]  ;;  %v888_v28 = vld [vmem:[%s5400_s10 + $0x18] sm:$0xff] }
  0x32   : > { %3673 = vmatpush3.bf16.msra.mxu1 %v3672_v11  ;;  %v3678_v27 = vpack.c.bf16 %v886_v25, %v885_v24  ;;  %v3681_v29 = vpack.c.bf16 %v888_v28, %v887_v26  ;;  %v889_v30 = vld [vmem:[%s5400_s10 + $0x20] sm:$0xff]  ;;  %v890_v31 = vld [vmem:[%s5400_s10 + $0x28] sm:$0xff]  ;;  %v891_v33 = vld [vmem:[%s5400_s10 + $0x30] sm:$0xff] }
  0x33   : > { %3674 = vmatprep.subr.bf16.mxu1 %v5335_v10  ;;  %v3372_v21 = vld [vmem:[%s5399_s3] ss:$0 sm:$0xff]  ;;  %v3684_v32 = vpack.c.bf16 %v890_v31, %v889_v30  ;;  %v892_v34 = vld [vmem:[%s5400_s10 + $0x38] sm:$0xff]  ;;  %v3376_v39 = vld [vmem:[%s5401_s8 + $0x1] ss:$0 sm:$0xff]  ;;  %s5215_s3 = sand.u32 1, %s4143_s30  }
  0x34   : > { %v3687_v35 = vpack.c.bf16 %v892_v34, %v891_v33  ;;  %v3374_v38 = vld [vmem:[%s5401_s8] ss:$0 sm:$0xff]  ;;  %v3377_v45 = vld [vmem:[%s5401_s8 + $0x2] ss:$0 sm:$0xff]  ;;  %v3378_v49 = vld [vmem:[%s5401_s8 + $0x3] ss:$0 sm:$0xff] }
  0x35   : > { %v3375_v40 = vld [vmem:[%s5402_s9] ss:$0 sm:$0xff]  ;;  %s5406_s9 = sld [smem:[#allocation48_spill]]  ;;  %s5469_s8 = sld [smem:[#allocation45_spill]] }
  0x36   : > { %3676 = vmatpush3.bf16.msra.mxu1 %v3675_v14  ;;  %v966_v61 = vld [vmem:[%s5403_s11] sm:$0x3]  ;;  %v1061_v1 = vld [vmem:[%s5404_s28 + $0x8] sm:$0xff]  ;;  %v1062_v11 = vld [vmem:[%s5404_s28 + $0x10] sm:$0xff]  ;;  %s5374_s1 = sshll.u32 %s5215_s3, 3  ;;  %s3247_s0 = scalar_lea.sflag [#allocation6], %s5215_s3 }
  0x37   : > { %3677 = vmatprep.subr.bf16.mxu1 %v5335_v10  ;;  %3624 = vmatpush3.msk.msra.mxu0 %vm978_vm4, %v966_v61  ;;  %v1064_v7 = vld [vmem:[%s5404_s28 + $0x20] sm:$0xff]  ;;  %v1066_v12 = vld [vmem:[%s5404_s28 + $0x30] sm:$0xff]  ;;  %v1081_v28 = vld [vmem:[%s5404_s28 + $0xa8] sm:$0xff] }
  0x38   : > { %v4465_v14 = vpack.c.bf16 %v1066_v12, %v1062_v11  ;;  %v1070_v24 = vld [vmem:[%s5404_s28 + $0x50] sm:$0xff]  ;;  %v1083_v31 = vld [vmem:[%s5404_s28 + $0xb8] sm:$0xff]  ;;  %v1080_v33 = vld [vmem:[%s5404_s28 + $0xa0] sm:$0xff] }
  0x39   : > { %v1074_v25 = vld [vmem:[%s5404_s28 + $0x70] sm:$0xff] }
  0x3a   : > { %v4501_v26 = vpack.c.bf16 %v1074_v25, %v1070_v24 }
  0x3b   : > { %v1854_v24 = vld [vmem:[%s5406_s9 + $0x90] sm:$0xff]  ;;  %v1855_v25 = vld [vmem:[%s5406_s9 + $0x98] sm:$0xff] }
  0xbd   : > { %v724_v2 = vpop.xlane.xlu0 %723 }
  0xbe   : > { %v726_v3 = vmul.f32 0.03125, %v724_v2  ;;  %v1065_v2 = vld [vmem:[%s5404_s28 + $0x28] sm:$0xff] }
  0xc0   : > { %v727_v4 = vsub.f32 %v4334_v0, %v726_v3  ;;  %v1063_v3 = vld [vmem:[%s5404_s28 + $0x18] sm:$0xff] }
  0xc2   : > { %v728_v5 = vmul.f32 %v727_v4, %v727_v4 }
  0xc4   : > { %v729_v6 = vsel %vm718_vm0, %v728_v5, 0.0  ;;  %v1067_v5 = vld [vmem:[%s5404_s28 + $0x38] sm:$0xff] }
  0xc5   : > { %730 = vadd.xlane.f32.xlu0 %v729_v6  ;;  %v1060_v6 = vld [vmem:[%s5404_s28] sm:$0xff]  ;;  %v4454_v8 = vpack.c.bf16 %v1067_v5, %v1063_v3 }
  0xc6   : > { %v4456_v9 = vpack.c.bf16 %v1064_v7, %v1060_v6 }
 0x152   : > { %v731_v15 = vpop.xlane.xlu0 %730 }
 0x153   : > { %v732_v16 = vmul.f32 0.03125, %v731_v15  ;;  %v1069_v15 = vld [vmem:[%s5404_s28 + $0x48] sm:$0xff] }
 0x155   : > { %v733_v17 = vadd.f32 1e-05, %v732_v16  ;;  %v1073_v16 = vld [vmem:[%s5404_s28 + $0x68] sm:$0xff] }
 0x157   : > { %4019 = vrsqrt.f32 %v733_v17  ;;  %v1071_v17 = vld [vmem:[%s5404_s28 + $0x58] sm:$0xff] }
 0x161   : > { %v4020_v18 = vpop.eup %4019 }
 0x162   : > { %v735_v20 = vmul.f32 %v4020_v18, %v727_v4  ;;  %v4443_v4 = vpack.c.bf16 %v1065_v2, %v1061_v1  ;;  %v4479_v18 = vpack.c.bf16 %v1073_v16, %v1069_v15  ;;  %v1852_v15 = vld [vmem:[%s5406_s9 + $0x80] sm:$0xff]  ;;  %v1853_v16 = vld [vmem:[%s5406_s9 + $0x88] sm:$0xff] }
 0x164   : > { %v742_v22 = vmul.f32 %v3371_v19, %v735_v20  ;;  %3690 = vmatprep.subr.bf16.mxu0 %v4443_v4  ;;  %v1075_v19 = vld [vmem:[%s5404_s28 + $0x78] sm:$0xff]  ;;  %v1068_v20 = vld [vmem:[%s5404_s28 + $0x40] sm:$0xff] }
 0x166   : > { %v749_v23 = vadd.f32 %v3372_v21, %v742_v22  ;;  %v1072_v21 = vld [vmem:[%s5404_s28 + $0x60] sm:$0xff]  ;;  %v4490_v22 = vpack.c.bf16 %v1075_v19, %v1071_v17  ;;  %v4646_v17 = vpack.c.bf16 %v1853_v16, %v1852_v15 }
 0x167   : > { %v1836_v19 = vld [vmem:[%s5406_s9] sm:$0xff] }
 0x168   : > { %3602 = vmatmul.mubr.msk.f32.vlgmr.msra.gmra.mrb[0].mxu1 %vm718_vm0, %v749_v23  ;;  %v4492_v23 = vpack.c.bf16 %v1072_v21, %v1068_v20  ;;  %v1837_v20 = vld [vmem:[%s5406_s9 + $0x8] sm:$0xff]  ;;  %v1872_v16 = vld [vmem:[%s5406_s9 + $0x120] sm:$0xff] }
 0x169   : > { %3620 = vmatprep.mubr.msk.f32.mxu1 %vm4154_vm1, %v5338_v13  ;;  %3679 = vmatpush3.bf16.msra.mxu1 %v3678_v27  ;;  %v1077_v27 = vld [vmem:[%s5404_s28 + $0x88] sm:$0xff]  ;;  %v4655_v21 = vpack.c.bf16 %v1837_v20, %v1836_v19 }
 0x16a   : > { %3680 = vmatprep.subr.bf16.mxu1 %v5335_v10  ;;  %v4515_v30 = vpack.c.bf16 %v1081_v28, %v1077_v27  ;;  %v4664_v27 = vpack.c.bf16 %v1855_v25, %v1854_v24  ;;  %v1838_v28 = vld [vmem:[%s5406_s9 + $0x10] sm:$0xff]  ;;  %v1873_v19 = vld [vmem:[%s5406_s9 + $0x128] sm:$0xff]  ;;  %v1860_v24 = vld [vmem:[%s5406_s9 + $0xc0] sm:$0xff] }
 0x16b   : > { %5407 = vst [vmem:[#allocation14_spill] sm:$0xff] %v4655_v21  ;;  %v4762_v20 = vpack.c.bf16 %v1873_v19, %v1872_v16  ;;  %v1861_v25 = vld [vmem:[%s5406_s9 + $0xc8] sm:$0xff] }
 0x16c   : > { %5408 = vst [vmem:[#allocation15_spill] sm:$0xff] %v4664_v27 }
 0x16d   : > { %3682 = vmatpush3.bf16.msra.mxu1 %v3681_v29  ;;  %v1079_v29 = vld [vmem:[%s5404_s28 + $0x98] sm:$0xff]  ;;  %5414 = vst [vmem:[#allocation21_spill] sm:$0xff] %v4762_v20 }
 0x16e   : > { %3683 = vmatprep.subr.bf16.mxu1 %v5335_v10  ;;  %v4526_v34 = vpack.c.bf16 %v1083_v31, %v1079_v29  ;;  %v1839_v29 = vld [vmem:[%s5406_s9 + $0x18] sm:$0xff]  ;;  %v1884_v31 = vld [vmem:[%s5406_s9 + $0x180] sm:$0xff] }
 0x171   : > { %3685 = vmatpush3.bf16.msra.mxu1 %v3684_v32  ;;  %v1076_v32 = vld [vmem:[%s5404_s28 + $0x80] sm:$0xff] }
 0x172   : > { %3686 = vmatprep.subr.bf16.mxu1 %v5335_v10 }
 0x175   : > { %3688 = vmatpush3.bf16.msra.mxu1 %v3687_v35  ;;  %v4528_v35 = vpack.c.bf16 %v1080_v33, %v1076_v32  ;;  %v4675_v32 = vpack.c.bf16 %v1839_v29, %v1838_v28  ;;  %v1885_v33 = vld [vmem:[%s5406_s9 + $0x188] sm:$0xff]  ;;  %v4772_v28 = vpack.c.bf16 %v1861_v25, %v1860_v24  ;;  %v1844_v29 = vld [vmem:[%s5406_s9 + $0x40] sm:$0xff] }
 0x176   : > { %3706 = vmatprep.subr.bf16.mxu1 %v4454_v8  ;;  %v1864_v24 = vld [vmem:[%s5406_s9 + $0xe0] sm:$0xff]  ;;  %v1865_v25 = vld [vmem:[%s5406_s9 + $0xe8] sm:$0xff] }
 0x177   : > { %5409 = vst [vmem:[#allocation16_spill] sm:$0xff] %v4675_v32  ;;  %5415 = vst [vmem:[#allocation22_spill] sm:$0xff] %v4772_v28 }
 0x23b   : > { %v4399_v36 = vpop.f32.mrb[0].mxu1 }
 0x23c   : > { %838 = vst.msk [vmem:[#allocation2 + $0x3] sm:$0xff] %vm834_vm2, %v4399_v36  ;;  %v3603_v37 = vpop.f32.mrb[1].mxu1 }
 0x23d   : > { %v1078_v37 = vld [vmem:[%s5404_s28 + $0x90] sm:$0xff] }
 0x243   : > { %v840_v41 = vld [vmem:[#allocation2] sm:$0xff] }
 0x244   : > { %v854_v42 = vld [vmem:[#allocation2 + $0x1] sm:$0xff]  ;;  %v846_v43 = vmul.f32 %v3374_v38, %v840_v41  ;;  %v1082_v38 = vld [vmem:[%s5404_s28 + $0xb0] sm:$0xff] }
 0x245   : > { %v862_v44 = vld [vmem:[#allocation2 + $0x2] sm:$0xff]  ;;  %v860_v47 = vmul.f32 %v3376_v39, %v854_v42  ;;  %v4537_v39 = vpack.c.bf16 %v1082_v38, %v1078_v37  ;;  %v1087_v42 = vld [vmem:[%s5404_s28 + $0xd8] sm:$0xff] }
 0x246   : > { %v853_v46 = vadd.f32 %v3375_v40, %v846_v43  ;;  %v4415_v48 = vld [vmem:[#allocation2 + $0x3] sm:$0xff]  ;;  %v868_v51 = vmul.f32 %v3377_v45, %v862_v44  ;;  %v1091_v44 = vld [vmem:[%s5404_s28 + $0xf8] sm:$0xff] }
 0x247   : > { %v876_v53 = vmul.f32 %v3378_v49, %v4415_v48  ;;  %v1085_v40 = vld [vmem:[%s5404_s28 + $0xc8] sm:$0xff]  ;;  %v1084_v45 = vld [vmem:[%s5404_s28 + $0xc0] sm:$0xff] }
 0x248   : > { %v861_v50 = vadd.f32 %v860_v47, %v853_v46  ;;  %v1089_v41 = vld [vmem:[%s5404_s28 + $0xe8] sm:$0xff]  ;;  %v1088_v46 = vld [vmem:[%s5404_s28 + $0xe0] sm:$0xff]  ;;  %v4562_v47 = vpack.c.bf16 %v1091_v44, %v1087_v42 }
 0x249   : > { %v4551_v43 = vpack.c.bf16 %v1089_v41, %v1085_v40  ;;  %v4564_v49 = vpack.c.bf16 %v1088_v46, %v1084_v45  ;;  %v1868_v37 = vld [vmem:[%s5406_s9 + $0x100] sm:$0xff]  ;;  %v1869_v38 = vld [vmem:[%s5406_s9 + $0x108] sm:$0xff]  ;;  %v4687_v40 = vpack.c.bf16 %v1885_v33, %v1884_v31  ;;  %v1890_v33 = vld [vmem:[%s5406_s9 + $0x1b0] sm:$0xff] }
 0x24a   : > { %v869_v52 = vadd.f32 %v868_v51, %v861_v50  ;;  %v1086_v50 = vld [vmem:[%s5404_s28 + $0xd0] sm:$0xff]  ;;  %v4689_v41 = vpack.c.bf16 %v1869_v38, %v1868_v37  ;;  %v1856_v42 = vld [vmem:[%s5406_s9 + $0xa0] sm:$0xff]  ;;  %v1857_v44 = vld [vmem:[%s5406_s9 + $0xa8] sm:$0xff] }
 0x24b   : > { %v1090_v51 = vld [vmem:[%s5404_s28 + $0xf0] sm:$0xff]  ;;  %v4699_v45 = vpack.c.bf16 %v1857_v44, %v1856_v42  ;;  %v1840_v46 = vld [vmem:[%s5406_s9 + $0x20] sm:$0xff]  ;;  %v1845_v31 = vld [vmem:[%s5406_s9 + $0x48] sm:$0xff] }
 0x24c   : > { %v877_v54 = vadd.f32 %v876_v53, %v869_v52  ;;  %v4573_v52 = vpack.c.bf16 %v1090_v51, %v1086_v50  ;;  %v3380_v53 = vld [vmem:[%s5311_s12] ss:$0 sm:$0xff]  ;;  %v1841_v50 = vld [vmem:[%s5406_s9 + $0x28] sm:$0xff]  ;;  %v1886_v51 = vld [vmem:[%s5406_s9 + $0x190] sm:$0xff]  ;;  %v4783_v37 = vpack.c.bf16 %v1845_v31, %v1844_v29  ;;  %v4843_v29 = vpack.c.bf16 %v1865_v25, %v1864_v24 }
 0x24d   : > { %5410 = vst [vmem:[#allocation17_spill] sm:$0xff] %v4699_v45  ;;  %v1891_v38 = vld [vmem:[%s5406_s9 + $0x1b8] sm:$0xff]  ;;  %v1874_v42 = vld [vmem:[%s5406_s9 + $0x130] sm:$0xff]  ;;  %v1848_v31 = vld [vmem:[%s5406_s9 + $0x60] sm:$0xff] }
 0x24e   : > { %v878_v55 = vsub.f32 0.0, %v877_v54  ;;  %5416 = vst [vmem:[#allocation23_spill] sm:$0xff] %v4783_v37  ;;  %v1875_v44 = vld [vmem:[%s5406_s9 + $0x138] sm:$0xff]  ;;  %5423 = vst [vmem:[#allocation30_spill] sm:$0xff] %v4843_v29  ;;  %v1896_v25 = vld [vmem:[%s5406_s9 + $0x1e0] sm:$0xff] }
 0x24f   : > { %v1851_v24 = vld [vmem:[%s5406_s9 + $0x78] sm:$0xff] }
 0x250   : > { %v879_v56 = vmul.f32 1.442695, %v878_v55 }
 0x252   : > { %4021 = vpow2.f32 %v879_v56 }
 0x25c   : > { %v4022_v57 = vpop.eup %4021 }
 0x25d   : > { %v881_v58 = vadd.f32 1.0, %v4022_v57 }
 0x25f   : > { %4023 = vrcp.f32 %v881_v58 }
 0x269   : > { %v4024_v59 = vpop.eup %4023 }
 0x26a   : > { %v4421_v60 = vmul.f32 %v4024_v59, %v877_v54 }
 0x26c   : > { %3621 = vmatmul.mubr.msk.f32.vlgmr.msra.gmra.mrb[2].mxu1 %vm834_vm2, %v4421_v60 }
 0x26d   : > { %1230 = vmatprep.mubr.f32.mxu1 %v5338_v13  ;;  %3708 = vmatpush1.bf16.msra.mxu1 %v4465_v14 }
 0x26e   : > { %3710 = vmatprep.subr.bf16.mxu1 %v4490_v22 }
 0x271   : > { %3712 = vmatpush1.bf16.msra.mxu1 %v4501_v26 }
 0x272   : > { %3714 = vmatprep.subr.bf16.mxu1 %v4526_v34 }
 0x275   : > { %3716 = vmatpush1.bf16.msra.mxu1 %v4537_v39 }
 0x276   : > { %3718 = vmatprep.subr.bf16.mxu1 %v4562_v47 }
 0x279   : > { %3720 = vmatpush1.bf16.msra.mxu1 %v4573_v52 }
 0x27a   : > { %3738 = vmatprep.subr.bf16.mxu1 %v4454_v8 }
 0x33f   : > { %v962_v62 = vpop.f32.mrb[2].mxu1 }
 0x340   : > { %1421 = vrot.lane.b32.xlu1 %v962_v62, %s5332_s2  ;;  %v3622_v63 = vpop.f32.mrb[3].mxu1  ;;  %3626 = vmatmul.mubr.msk.f32.vlgmr.msra.gmra.mrb[0].mxu0 %vm974_vm5, %v962_v62  ;;  %s5405_s2 = sld [smem:[#allocation46_spill]] }
 0x341   : > { %1159 = vmatprep.mubr.f32.mxu0 %v5338_v13  ;;  %3692 = vmatpush1.bf16.msra.mxu0 %v4456_v9 }
 0x342   : > { %3694 = vmatprep.subr.bf16.mxu0 %v4479_v18 }
 0x344   : > { %1686 = vrot.lane.b32.xlu1 %v962_v62, %s5333_s6  ;;  %s5436_s6 = smov 118  }
 0x345   : > { %3696 = vmatpush1.bf16.msra.mxu0 %v4492_v23 }
 0x346   : > { %3698 = vmatprep.subr.bf16.mxu0 %v4515_v30  ;;  %v4602_v2 = vld [vmem:[%s5405_s2 + $0x8] sm:$0xff]  ;;  %v4611_v6 = vld [vmem:[%s5405_s2] sm:$0xff]  ;;  %v4619_v7 = vld [vmem:[%s5405_s2 + $0x18] sm:$0xff] }
 0x347   : > { %v4628_v11 = vld [vmem:[%s5405_s2 + $0x10] sm:$0xff] }
 0x349   : > { %3700 = vmatpush1.bf16.msra.mxu0 %v4528_v35 }
 0x34a   : > { %3702 = vmatprep.subr.bf16.mxu0 %v4551_v43 }
 0x34d   : > { %3704 = vmatpush1.bf16.msra.mxu0 %v4564_v49 }
 0x34e   : > { %3722 = vmatprep.subr.bf16.mxu0 %v4443_v4 }
 0x3b2   : > { %v1422_v3 = vpop.permute.xlu1 %1421 }
 0x3b6   : > { %v1687_v12 = vpop.permute.xlu1 %1686 }
 0x413   : > { %v1048_v54 = vpop.f32.mrb[0].mxu0 }
 0x414   : > { %v1049_v55 = vadd.f32 %v3380_v53, %v1048_v54  ;;  %v3627_v56 = vpop.f32.mrb[1].mxu0  ;;  %v4711_v53 = vpack.c.bf16 %v1841_v50, %v1840_v46  ;;  %v1887_v54 = vld [vmem:[%s5406_s9 + $0x198] sm:$0xff]  ;;  %v4795_v46 = vpack.c.bf16 %v1891_v38, %v1890_v33  ;;  %v4797_v50 = vpack.c.bf16 %v1875_v44, %v1874_v42  ;;  %v1849_v33 = vld [vmem:[%s5406_s9 + $0x68] sm:$0xff]  ;;  %v1894_v38 = vld [vmem:[%s5406_s9 + $0x1d0] sm:$0xff] }
 0x415   : > { %v1871_v56 = vld [vmem:[%s5406_s9 + $0x118] sm:$0xff]  ;;  %v4855_v42 = vpack.c.bf16 %v1849_v33, %v1848_v31  ;;  %v1897_v33 = vld [vmem:[%s5406_s9 + $0x1e8] sm:$0xff] }
 0x416   : > { %v1053_v57 = vmin.f32 %v1049_v55, 20.0  ;;  %vm1052_vm6 = vcmp.gt.f32.partialorder %v1049_v55, 20.0  ;;  %5411 = vst [vmem:[#allocation18_spill] sm:$0xff] %v4711_v53  ;;  %5417 = vst [vmem:[#allocation24_spill] sm:$0xff] %v4795_v46  ;;  %v1895_v44 = vld [vmem:[%s5406_s9 + $0x1d8] sm:$0xff] }
 0x417   : > { %5418 = vst [vmem:[#allocation25_spill] sm:$0xff] %v4797_v50  ;;  %5424 = vst [vmem:[#allocation31_spill] sm:$0xff] %v4855_v42 }
 0x418   : > { %v1054_v58 = vmul.f32 1.442695, %v1053_v57  ;;  %v4723_v57 = vpack.c.bf16 %v1887_v54, %v1886_v51  ;;  %v1862_v51 = vld [vmem:[%s5406_s9 + $0xd0] sm:$0xff]  ;;  %v1863_v54 = vld [vmem:[%s5406_s9 + $0xd8] sm:$0xff] }
 0x41a   : > { %4025 = vpow2.f32 %v1054_v58 }
 0x424   : > { %v4026_v59 = vpop.eup %4025 }
 0x425   : > { %v1056_v61 = vadd.f32 1.0, %v4026_v59  ;;  %v1858_v59 = vld [vmem:[%s5406_s9 + $0xb0] sm:$0xff] }
 0x427   : > { %4027 = vlog2.f32 %v1056_v61  ;;  %v1859_v61 = vld [vmem:[%s5406_s9 + $0xb8] sm:$0xff] }
 0x431   : > { %v4028_v62 = vpop.eup %4027 }
 0x432   : > { %v1058_v63 = vmul.f32 0.6931472, %v4028_v62  ;;  %v4735_v62 = vpack.c.bf16 %v1859_v61, %v1858_v59  ;;  %v1847_v59 = vld [vmem:[%s5406_s9 + $0x58] sm:$0xff]  ;;  %v1892_v61 = vld [vmem:[%s5406_s9 + $0x1c0] sm:$0xff] }
 0x434   : > { %v1059_v1 = vsel %vm1052_vm6, %v1049_v55, %v1058_v63  ;;  %v1870_v55 = vld [vmem:[%s5406_s9 + $0x110] sm:$0xff]  ;;  %5412 = vst [vmem:[#allocation19_spill] sm:$0xff] %v4735_v62 }
 0x435   : > { %3383 = vmatmul.mubr.msk.f32.vlgmr.msra.gmra.mrb[2].mxu0 %vm834_vm2, %v1059_v1  ;;  %3384 = vmatmul.mubr.msk.f32.vlgmr.msra.gmra.mrb[4].mxu1 %vm834_vm2, %v1059_v1  ;;  %v1271_v5 = vmul.f32 %v1059_v1, %v4421_v60  ;;  %v4725_v58 = vpack.c.bf16 %v1871_v56, %v1870_v55  ;;  %v1842_v63 = vld [vmem:[%s5406_s9 + $0x30] sm:$0xff]  ;;  %v1843_v1 = vld [vmem:[%s5406_s9 + $0x38] sm:$0xff]  ;;  %v4807_v55 = vpack.c.bf16 %v1863_v54, %v1862_v51 }
 0x436   : > { %3724 = vmatpush1.bf16.msra.mxu0 %v4456_v9  ;;  %3740 = vmatpush1.bf16.msra.mxu1 %v4465_v14  ;;  %v1846_v56 = vld [vmem:[%s5406_s9 + $0x50] sm:$0xff]  ;;  %v1879_v54 = vld [vmem:[%s5406_s9 + $0x158] sm:$0xff] }
 0x437   : > { %3726 = vmatprep.subr.bf16.mxu0 %v4479_v18  ;;  %3742 = vmatprep.subr.bf16.mxu1 %v4490_v22  ;;  %5419 = vst [vmem:[#allocation26_spill] sm:$0xff] %v4807_v55  ;;  %v1878_v51 = vld [vmem:[%s5406_s9 + $0x150] sm:$0xff] }
 0x438   : > { %1339 = vmatprep.mubr.f32.mxu0 %v5338_v13  ;;  %1410 = vmatprep.mubr.f32.mxu1 %v5338_v13 }
 0x43a   : > { %3728 = vmatpush1.bf16.msra.mxu0 %v4492_v23  ;;  %3744 = vmatpush1.bf16.msra.mxu1 %v4501_v26 }
 0x43b   : > { %3730 = vmatprep.subr.bf16.mxu0 %v4515_v30  ;;  %3746 = vmatprep.subr.bf16.mxu1 %v4526_v34 }
 0x43e   : > { %3732 = vmatpush1.bf16.msra.mxu0 %v4528_v35  ;;  %3748 = vmatpush1.bf16.msra.mxu1 %v4537_v39 }
 0x43f   : > { %3734 = vmatprep.subr.bf16.mxu0 %v4551_v43  ;;  %3750 = vmatprep.subr.bf16.mxu1 %v4562_v47 }
 0x442   : > { %3736 = vmatpush1.bf16.msra.mxu0 %v4564_v49  ;;  %3752 = vmatpush1.bf16.msra.mxu1 %v4573_v52 }
 0x443   : > { %1426 = vmatprep.subr.mxu0 %v4602_v2  ;;  %1690 = vmatprep.subr.mxu1 %v4602_v2 }
 0x445   : > { %3385 = vmatmul.mubr.msk.f32.vlgmr.msra.gmra.mrb[4].mxu0 %vm834_vm2, %v1271_v5  ;;  %3386 = vmatmul.mubr.msk.f32.vlgmr.msra.gmra.mrb[6].mxu1 %vm834_vm2, %v1271_v5  ;;  %v4747_v5 = vpack.c.bf16 %v1843_v1, %v1842_v63  ;;  %v4819_v63 = vpack.c.bf16 %v1847_v59, %v1846_v56  ;;  %v1893_v1 = vld [vmem:[%s5406_s9 + $0x1c8] sm:$0xff]  ;;  %v4867_v56 = vpack.c.bf16 %v1895_v44, %v1894_v38  ;;  %v1880_v38 = vld [vmem:[%s5406_s9 + $0x160] sm:$0xff] }
 0x446   : > { %1427 = vmatpush1.msra.mxu0 %v4611_v6  ;;  %1490 = vmatprep.mubr.f32.mxu0 %v5338_v13  ;;  %v4831_v16 = vpack.c.bf16 %v1893_v1, %v1892_v61  ;;  %v4869_v59 = vpack.c.bf16 %v1879_v54, %v1878_v51  ;;  %v1866_v61 = vld [vmem:[%s5406_s9 + $0xf0] sm:$0xff]  ;;  %v1867_v1 = vld [vmem:[%s5406_s9 + $0xf8] sm:$0xff]  ;;  %v1881_v44 = vld [vmem:[%s5406_s9 + $0x168] sm:$0xff]  ;;  %v4903_v51 = vpack.c.bf16 %v1897_v33, %v1896_v25 }
 0x447   : > { %1691 = vmatpush1.msra.mxu1 %v4611_v6  ;;  %1754 = vmatprep.mubr.f32.mxu1 %v5338_v13  ;;  %5413 = vst [vmem:[#allocation20_spill] sm:$0xff] %v4747_v5  ;;  %5420 = vst [vmem:[#allocation27_spill] sm:$0xff] %v4819_v63  ;;  %v4905_v54 = vpack.c.bf16 %v1881_v44, %v1880_v38  ;;  %v1883_v25 = vld [vmem:[%s5406_s9 + $0x178] sm:$0xff]  ;;  %v1239_v38 = vlaneseq }
 0x448   : > { %1497 = vmatprep.subr.mxu0 %v4619_v7  ;;  %3754 = vmatprep.subr.bf16.mxu1 %v4646_v17  ;;  %5421 = vst [vmem:[#allocation28_spill] sm:$0xff] %v4831_v16  ;;  %5425 = vst [vmem:[#allocation32_spill] sm:$0xff] %v4867_v56 }
 0x449   : > { %3387 = vmatmul.mubr.msk.f32.vlgmr.msra.gmra.mrb[6].mxu0 %vm1423_vm7, %v1422_v3  ;;  %3389 = vmatmul.mubr.msk.f32.vlgmr.msra.gmra.mrb[8].mxu1 %vm1423_vm7, %v1687_v12  ;;  %5426 = vst [vmem:[#allocation33_spill] sm:$0xff] %v4869_v59  ;;  %5429 = vst [vmem:[#allocation36_spill] sm:$0xff] %v4903_v51  ;;  %v4930_v44 = vshrl.u32 %v1239_v38, 7  ;;  %v3392_v38 = vld [vmem:[%s5314_s15 + $0x3] ss:$0 sm:$0xff] }
 0x44a   : > { %1498 = vmatpush1.msra.mxu0 %v4628_v11  ;;  %1561 = vmatprep.mubr.f32.mxu0 %v5338_v13  ;;  %5430 = vst [vmem:[#allocation37_spill] sm:$0xff] %v4905_v54 }
 0x44b   : > { %1761 = vmatprep.subr.mxu0 %v4619_v7  ;;  %3756 = vmatpush3.bf16.msra.mxu1 %v4655_v21  ;;  %5433 = vst [vmem:[#allocation40_spill] sm:$0xff] %v4930_v44 }
 0x44c   : > { %3758 = vmatprep.subr.bf16.mxu1 %v4664_v27 }
 0x44d   : > { %3388 = vmatmul.mubr.msk.f32.vlgmr.msra.gmra.mrb[8].mxu0 %vm1423_vm7, %v1422_v3  ;;  %v1888_v3 = vld [vmem:[%s5406_s9 + $0x1a0] sm:$0xff] }
 0x44e   : > { %1762 = vmatpush1.msra.mxu0 %v4628_v11  ;;  %1825 = vmatprep.mubr.f32.mxu0 %v5338_v13 }
 0x44f   : > { %3760 = vmatpush3.bf16.msra.mxu1 %v4675_v32  ;;  %3786 = vmatprep.subr.bf16.mxu0 %v4687_v40 }
 0x450   : > { %3762 = vmatprep.subr.bf16.mxu1 %v4699_v45 }
 0x451   : > { %3390 = vmatmul.mubr.msk.f32.vlgmr.msra.gmra.mrb[10].mxu0 %vm1423_vm7, %v1687_v12  ;;  %v1889_v12 = vld [vmem:[%s5406_s9 + $0x1a8] sm:$0xff] }
 0x452   : > { %3788 = vmatpush3.bf16.msra.mxu0 %v4689_v41  ;;  %v4753_v15 = vpack.c.bf16 %v1889_v12, %v1888_v3  ;;  %v1876_v3 = vld [vmem:[%s5406_s9 + $0x140] sm:$0xff]  ;;  %v1877_v12 = vld [vmem:[%s5406_s9 + $0x148] sm:$0xff] }
 0x453   : > { %3764 = vmatpush3.bf16.msra.mxu1 %v4711_v53  ;;  %3790 = vmatprep.subr.bf16.mxu0 %v4723_v57  ;;  %v4833_v19 = vpack.c.bf16 %v1877_v12, %v1876_v3  ;;  %v4879_v3 = vpack.c.bf16 %v1867_v1, %v1866_v61  ;;  %v1850_v12 = vld [vmem:[%s5406_s9 + $0x70] sm:$0xff]  ;;  %v1899_v1 = vld [vmem:[%s5406_s9 + $0x1f8] sm:$0xff] }
 0x454   : > { %3766 = vmatprep.subr.bf16.mxu1 %v4735_v62  ;;  %v4891_v31 = vpack.c.bf16 %v1851_v24, %v1850_v12  ;;  %v1898_v61 = vld [vmem:[%s5406_s9 + $0x1f0] sm:$0xff] }
 0x455   : > { %5422 = vst [vmem:[#allocation29_spill] sm:$0xff] %v4833_v19  ;;  %5427 = vst [vmem:[#allocation34_spill] sm:$0xff] %v4879_v3  ;;  %v4917_v12 = vpack.c.bf16 %v1899_v1, %v1898_v61  ;;  %v1882_v24 = vld [vmem:[%s5406_s9 + $0x170] sm:$0xff]  ;;  %v5347_v61 = vsub.s32 0, %v4930_v44  ;;  %v1237_v1 = vld [vmem:[%s5312_s13] sm:$0xf] }
 0x456   : > { %3792 = vmatpush3.bf16.msra.mxu0 %v4725_v58  ;;  %5428 = vst [vmem:[#allocation35_spill] sm:$0xff] %v4891_v31  ;;  %v4925_v33 = vpack.c.bf16 %v1883_v25, %v1882_v24  ;;  %v5354_v24 = vsub.s32 2, %v4930_v44  ;;  %v5357_v25 = vsub.s32 3, %v4930_v44  ;;  %s4159_s9 = smov [#allocation5]  }
 0x457   : > { %3768 = vmatpush3.bf16.msra.mxu1 %v4747_v5  ;;  %3794 = vmatprep.subr.bf16.mxu0 %v4753_v15  ;;  %5431 = vst [vmem:[#allocation38_spill] sm:$0xff] %v4917_v12  ;;  %v1242_v0 = vrot.slane %v1237_v1, %v5347_v61  ;;  %v2054_v61 = vmul.f32 %v3392_v38, %v4415_v48  ;;  %s4061_s11 = sshll.u32 %s4159_s9, 4  ;;  %s4062_s11 = int_to_ptr.vmem [resolvable:$false] %s4061_s11 }
 0x458   : > { %3770 = vmatprep.subr.bf16.mxu1 %v4772_v28  ;;  %5432 = vst [vmem:[#allocation39_spill] sm:$0xff] %v4925_v33 }
 0x45a   : > { %3796 = vmatpush3.bf16.msra.mxu0 %v4762_v20 }
 0x45b   : > { %3772 = vmatpush3.bf16.msra.mxu1 %v4783_v37  ;;  %3798 = vmatprep.subr.bf16.mxu0 %v4795_v46  ;;  %v3393_v37 = vld [vmem:[%s5315_s16] ss:$0 sm:$0xff] }
 0x45c   : > { %3774 = vmatprep.subr.bf16.mxu1 %v4807_v55 }
 0x45e   : > { %3800 = vmatpush3.bf16.msra.mxu0 %v4797_v50 }
 0x45f   : > { %3776 = vmatpush3.bf16.msra.mxu1 %v4819_v63  ;;  %3802 = vmatprep.subr.bf16.mxu0 %v4831_v16 }
 0x460   : > { %3778 = vmatprep.subr.bf16.mxu1 %v4843_v29 }
 0x462   : > { %3804 = vmatpush3.bf16.msra.mxu0 %v4833_v19 }
 0x463   : > { %3780 = vmatpush3.bf16.msra.mxu1 %v4855_v42  ;;  %3806 = vmatprep.subr.bf16.mxu0 %v4867_v56 }
 0x464   : > { %3782 = vmatprep.subr.bf16.mxu1 %v4879_v3 }
 0x466   : > { %3808 = vmatpush3.bf16.msra.mxu0 %v4869_v59 }
 0x467   : > { %3784 = vmatpush3.bf16.msra.mxu1 %v4891_v31  ;;  %3810 = vmatprep.subr.bf16.mxu0 %v4903_v51  ;;  %v1250_v31 = vrot.slane %v1237_v1, %v5354_v24  ;;  %v2062_v24 = vld [vmem:[#allocation2 + $0x4] sm:$0xff] }
 0x468   : > { %3817 = vmatprep.subr.bf16.mxu1 %v5335_v10  ;;  %v5350_v10 = vsub.s32 1, %v4930_v44  ;;  %v3394_v44 = vld [vmem:[%s5314_s15 + $0x2] ss:$0 sm:$0xff] }
 0x469   : > { %v2068_v48 = vmul.f32 %v3394_v44, %v2062_v24 }
 0x46a   : > { %3812 = vmatpush3.bf16.msra.mxu0 %v4905_v54 }
 0x46b   : > { %3814 = vmatprep.subr.bf16.mxu0 %v4917_v12 }
 0x46e   : > { %3816 = vmatpush3.bf16.msra.mxu0 %v4925_v33  ;;  %v1254_v33 = vrot.slane %v1237_v1, %v5357_v25 }
 0x46f   : > { %3647 = vmatprep.subr.mxu0 %v5338_v13  ;;  %v1246_v13 = vrot.slane %v1237_v1, %v5350_v10  ;;  %v2061_v1 = vadd.f32 %v3393_v37, %v2054_v61 }
 0x508   : > { %v1161_v3 = vpop.f32.mrb[2].mxu0  ;;  %v1232_v42 = vpop.f32.mrb[4].mxu1 }
 0x509   : > { %v1259_v29 = vmul.f32 %v1242_v0, %v1161_v3  ;;  %v1163_v63 = vpop.f32.mrb[3].mxu0  ;;  %v1234_v12 = vpop.f32.mrb[5].mxu1  ;;  %v1261_v10 = vmul.f32 %v1250_v31, %v1232_v42  ;;  %v2078_v31 = vld [vmem:[#allocation2 + $0x6] sm:$0xff] }
 0x50a   : > { %v1260_v54 = vmul.f32 %v1246_v13, %v1163_v63  ;;  %v1262_v59 = vmul.f32 %v1254_v33, %v1234_v12  ;;  %v2070_v13 = vld [vmem:[#allocation2 + $0x5] sm:$0xff]  ;;  %v3395_v63 = vld [vmem:[%s5314_s15 + $0x1] ss:$0 sm:$0xff] }
 0x50b   : > { %v1263_v55 = vmul.f32 1.442695, %v1259_v29  ;;  %v1267_v0 = vmul.f32 1.442695, %v1261_v10  ;;  %v2069_v29 = vadd.f32 %v2068_v48, %v2061_v1  ;;  %v2076_v42 = vmul.f32 %v3395_v63, %v2070_v13 }
 0x50c   : > { %v1265_v51 = vmul.f32 1.442695, %v1260_v54  ;;  %v1269_v3 = vmul.f32 1.442695, %v1262_v59  ;;  %v3396_v54 = vld [vmem:[%s5314_s15] ss:$0 sm:$0xff] }
 0x50d   : > { %4029 = vpow2.f32 %v1263_v55  ;;  %v2077_v37 = vadd.f32 %v2076_v42, %v2069_v29 }
 0x50e   : > { %4031 = vpow2.f32 %v1265_v51  ;;  %v2084_v51 = vmul.f32 %v3396_v54, %v2078_v31 }
 0x50f   : > { %4033 = vpow2.f32 %v1267_v0 }
 0x510   : > { %4035 = vpow2.f32 %v1269_v3  ;;  %v4963_v61 = vadd.f32 %v2084_v51, %v2077_v37 }
 0x512   : > { %v2086_v31 = vsub.f32 0.0, %v4963_v61 }
 0x517   : > { %v4030_v59 = vpop.eup %4029 }
 0x518   : > { %v1341_v55 = vpop.f32.mrb[4].mxu0  ;;  %v1412_v10 = vpop.f32.mrb[6].mxu1  ;;  %v1576_v38 = vrot.slane %v4030_v59, 7 }
 0x519   : > { %v1343_v12 = vpop.f32.mrb[5].mxu0  ;;  %v1414_v33 = vpop.f32.mrb[7].mxu1 }
 0x51a   : > { %v4032_v44 = vpop.eup %4031  ;;  %v1585_v25 = vsel %vm1584_vm8, 1.0, %v1576_v38 }
 0x51b   : > { %v4034_v0 = vpop.eup %4033  ;;  %v1577_v13 = vrot.slane %v4032_v44, 7 }
 0x51c   : > { %v1492_v24 = vpop.f32.mrb[6].mxu0  ;;  %v4965_v1 = vpop.f32.mrb[8].mxu1  ;;  %v1578_v28 = vrot.slane %v4034_v0, 7 }
 0x51d   : > { %v1568_v3 = vmul.f32 %v1492_v24, %v1341_v55  ;;  %v1494_v48 = vpop.f32.mrb[7].mxu0  ;;  %v4967_v63 = vpop.f32.mrb[9].mxu1  ;;  %v1586_v56 = vsel %vm1584_vm8, 1.0, %v1577_v13 }
 0x51e   : > { %v4036_v29 = vpop.eup %4035  ;;  %v1569_v42 = vmul.f32 %v1494_v48, %v1343_v12  ;;  %v2087_v12 = vmul.f32 1.442695, %v2086_v31  ;;  %v1613_v48 = vmul.f32 %v4030_v59, %v1585_v25  ;;  %v1614_v38 = vmul.f32 %v4032_v44, %v1586_v56 }
 0x51f   : > { %v1593_v54 = vrot.slane %v1568_v3, 7  ;;  %v1579_v19 = vrot.slane %v4036_v29, 7  ;;  %v1587_v20 = vsel %vm1584_vm8, 1.0, %v1578_v28 }
 0x520   : > { %v1594_v37 = vrot.slane %v1569_v42, 7  ;;  %v1563_v51 = vpop.f32.mrb[8].mxu0  ;;  %4037 = vpow2.f32 %v2087_v12 }
 0x521   : > { %v1601_v5 = vsel %vm1584_vm8, 0.0, %v1593_v54  ;;  %v1570_v55 = vmul.f32 %v1563_v51, %v1412_v10  ;;  %v1565_v24 = vpop.f32.mrb[9].mxu0  ;;  %v1588_v13 = vsel %vm1584_vm8, 1.0, %v1579_v19 }
 0x522   : > { %v1605_v62 = vmul.f32 %v4030_v59, %v1601_v5  ;;  %v1602_v53 = vsel %vm1584_vm8, 0.0, %v1594_v37  ;;  %v1571_v16 = vmul.f32 %v1565_v24, %v1414_v33  ;;  %v1615_v59 = vmul.f32 %v4034_v0, %v1587_v20 }
 0x523   : > { %v1606_v50 = vmul.f32 %v4032_v44, %v1602_v53  ;;  %v1595_v45 = vrot.slane %v1570_v55, 7  ;;  %v1621_v53 = vrot.slane %v1613_v48, 6  ;;  %v1622_v44 = vrot.slane %v1614_v38, 6 }
 0x524   : > { %v1609_v32 = vadd.f32 %v1605_v62, %v1568_v3  ;;  %v1596_v46 = vrot.slane %v1571_v16, 7  ;;  %v4975_v27 = vpop.f32.mrb[10].mxu0 }
 0x525   : > { %v1610_v54 = vadd.f32 %v1606_v50, %v1569_v42  ;;  %v1603_v10 = vsel %vm1584_vm8, 0.0, %v1595_v45  ;;  %v4979_v5 = vpop.f32.mrb[11].mxu0  ;;  %v1616_v50 = vmul.f32 %v4036_v29, %v1588_v13  ;;  %v1629_v24 = vsel %vm978_vm4, 1.0, %v1621_v53 }
 0x526   : > { %v1637_v37 = vrot.slane %v1609_v32, 6  ;;  %v1607_v33 = vmul.f32 %v4034_v0, %v1603_v10  ;;  %v1604_v25 = vsel %vm1584_vm8, 0.0, %v1596_v46  ;;  %v1623_v10 = vrot.slane %v1615_v59, 6 }
 0x527   : > { %v1638_v62 = vrot.slane %v1610_v54, 6  ;;  %v1608_v56 = vmul.f32 %v4036_v29, %v1604_v25  ;;  %v1630_v25 = vsel %vm978_vm4, 1.0, %v1622_v44 }
 0x528   : > { %v1645_v28 = vsel %vm978_vm4, 0.0, %v1637_v37  ;;  %v1611_v3 = vadd.f32 %v1607_v33, %v1570_v55  ;;  %v1624_v37 = vrot.slane %v1616_v50, 6  ;;  %v1657_v33 = vmul.f32 %v1629_v24, %v1613_v48  ;;  %v2093_v24 = vld [vmem:[%s5316_s17] sm:$0xff] }
 0x529   : > { %v1649_v42 = vmul.f32 %v1645_v28, %v1613_v48  ;;  %v1646_v45 = vsel %vm978_vm4, 0.0, %v1638_v62  ;;  %v1612_v19 = vadd.f32 %v1608_v56, %v1571_v16  ;;  %v1658_v28 = vmul.f32 %v1630_v25, %v1614_v38 }
 0x52a   : > { %v1650_v31 = vmul.f32 %v1646_v45, %v1614_v38  ;;  %v1639_v51 = vrot.slane %v1611_v3, 6  ;;  %v1632_v44 = vsel %vm978_vm4, 1.0, %v1624_v37  ;;  %v2094_v38 = vld [vmem:[%s5316_s17 + $0x8] sm:$0xff] }
 0x52b   : > { %v1653_v46 = vadd.f32 %v1649_v42, %v1609_v32  ;;  %v1640_v12 = vrot.slane %v1612_v19, 6  ;;  %v1631_v32 = vsel %vm978_vm4, 1.0, %v1623_v10  ;;  %v4038_v42 = vpop.eup %4037  ;;  %v1660_v25 = vmul.f32 %v1632_v44, %v1616_v50 }
 0x52c   : > { %v1654_v20 = vadd.f32 %v1650_v31, %v1610_v54  ;;  %v1647_v0 = vsel %vm978_vm4, 0.0, %v1639_v51  ;;  %v827_v44 = vsub.f32 0.0, %v4399_v36 }
 0x52d   : > { %v1665_v55 = vrot.slane %v1653_v46, 4  ;;  %v1648_v29 = vsel %vm978_vm4, 0.0, %v1640_v12  ;;  %v1651_v13 = vmul.f32 %v1647_v0, %v1615_v59  ;;  %v1659_v0 = vmul.f32 %v1631_v32, %v1615_v59  ;;  %v2098_v32 = vld [vmem:[%s5316_s17 + $0x28] sm:$0xff] }
 0x52e   : > { %v1666_v16 = vrot.slane %v1654_v20, 4  ;;  %v1652_v62 = vmul.f32 %v1648_v29, %v1616_v50  ;;  %v3818_v29 = vpack.c.bf16 %v2094_v38, %v2093_v24 }
 0x52f   : > { %v1674_v56 = vsel %vm1673_vm9, 0.0, %v1665_v55  ;;  %v1655_v53 = vadd.f32 %v1651_v13, %v1611_v3  ;;  %v2089_v13 = vadd.f32 1.0, %v4038_v42 }
 0x530   : > { %v1678_v45 = vmul.f32 %v1674_v56, %v1657_v33  ;;  %v1675_v54 = vsel %vm1673_vm9, 0.0, %v1666_v16  ;;  %v1656_v31 = vadd.f32 %v1652_v62, %v1612_v19  ;;  %v2095_v16 = vld [vmem:[%s5316_s17 + $0x10] sm:$0xff]  ;;  %v5434_v62 = vmov 0.0  }
 0x531   : > { %v1679_v51 = vmul.f32 %v1675_v54, %v1658_v28  ;;  %v1667_v21 = vrot.slane %v1655_v53, 4  ;;  %4039 = vrcp.f32 %v2089_v13  ;;  %v5435_v56 = vmov 0.0|0.0   ;;  %v2097_v28 = vld [vmem:[%s5316_s17 + $0x20] sm:$0xff] }
 0x532   : > { %v1682_v12 = vadd.f32 %v1678_v45, %v1653_v46  ;;  %v1668_v48 = vrot.slane %v1656_v31, 4 }
 0x533   : > { %v1683_v3 = vadd.f32 %v1679_v51, %v1654_v20  ;;  %v1676_v10 = vsel %vm1673_vm9, 0.0, %v1667_v21  ;;  %v2096_v21 = vld [vmem:[%s5316_s17 + $0x18] sm:$0xff] }
 0x534   : > { %v1832_v37 = vmul.f32 %v4965_v1, %v1682_v12  ;;  %v1680_v19 = vmul.f32 %v1676_v10, %v1659_v0  ;;  %v1677_v55 = vsel %vm1673_vm9, 0.0, %v1668_v48  ;;  %v3391_v0 = vld [vmem:[%s5313_s14] ss:$0 sm:$0xff] }
 0x535   : > { %v1833_v59 = vmul.f32 %v4967_v63, %v1683_v3  ;;  %v1681_v46 = vmul.f32 %v1677_v55, %v1660_v25  ;;  %v3821_v63 = vpack.c.bf16 %v2096_v21, %v2095_v16  ;;  %v1907_v38 = vmul.f32 %v3391_v0, %v4421_v60 }
 0x536   : > { %v1684_v33 = vadd.f32 %v1680_v19, %v1655_v53  ;;  %v2100_v53 = vld [vmem:[%s5316_s17 + $0x38] sm:$0xff] }
 0x537   : > { %v1685_v50 = vadd.f32 %v1681_v46, %v1656_v31  ;;  %1972 = vmatprep.mubr.f32.mxu1 %v1833_v59  ;;  %v828_v31 = vmul.f32 1.442695, %v827_v44 }
 0x538   : > { %v1834_v1 = vmul.f32 %v4975_v27, %v1684_v33  ;;  %1973 = vmatmul.mubr.f32.vlgmr.msra.gmra.mrb[10].mxu1 %v1832_v37  ;;  %v3824_v27 = vpack.c.bf16 %v2098_v32, %v2097_v28  ;;  %v5460_v32 = vld [vmem:[#allocation39_spill] sm:$0xff] }
 0x539   : > { %v1835_v20 = vmul.f32 %v4979_v5, %v1685_v50  ;;  %3819 = vmatpush3.bf16.msra.mxu1 %v3818_v29  ;;  %3644 = vmatprep.mubr.msk.f32.mxu1 %vm4154_vm1, %v5434_v62  ;;  %v2099_v5 = vld [vmem:[%s5316_s17 + $0x30] sm:$0xff]  ;;  %4041 = vpow2.f32 %v828_v31 }
 0x53a   : > { %3820 = vmatprep.subr.bf16.mxu1 %v5435_v56  ;;  %v3827_v42 = vpack.c.bf16 %v2100_v53, %v2099_v5  ;;  %v5462_v5 = vld [vmem:[#allocation34_spill] sm:$0xff]  ;;  %v5463_v53 = vld [vmem:[#allocation35_spill] sm:$0xff] }
 0x53b   : > { %2042 = vmatprep.mubr.f32.mxu0 %v1835_v20  ;;  %v4040_v45 = vpop.eup %4039 }
 0x53c   : > { %2043 = vmatmul.mubr.f32.vlgmr.msra.gmra.mrb[12].mxu0 %v1834_v1  ;;  %v5030_v54 = vmul.f32 %v4040_v45, %v4963_v61  ;;  %v2174_v61 = vld [vmem:[%s5317_s18] sm:$0x3]  ;;  %v5464_v45 = vld [vmem:[#allocation40_spill] sm:$0xff] }
 0x53d   : > { %3822 = vmatpush3.bf16.msra.mxu1 %v3821_v63  ;;  %3649 = vmatprep.mubr.msk.f32.mxu0 %vm4154_vm1, %v5434_v62  ;;  %v5466_v31 = vsub.s32 1, %v5464_v45 }
 0x53e   : > { %3823 = vmatprep.subr.bf16.mxu1 %v5435_v56  ;;  %3648 = vmatpush3.msk.msra.mxu0 %vm978_vm4, %v2174_v61  ;;  %v5465_v61 = vsub.s32 0, %v5464_v45 }
 0x53f   : > { %3830 = vmatprep.subr.bf16.mxu0 %v4443_v4 }
 0x541   : > { %3825 = vmatpush3.bf16.msra.mxu1 %v3824_v27  ;;  %v5461_v27 = vld [vmem:[#allocation31_spill] sm:$0xff] }
 0x542   : > { %3826 = vmatprep.subr.bf16.mxu1 %v5435_v56 }
 0x543   : > { %v4042_v51 = vpop.eup %4041 }
 0x545   : > { %3828 = vmatpush3.bf16.msra.mxu1 %v3827_v42  ;;  %v2411_v42 = vld [vmem:[%s5319_s20] sm:$0xf] }
 0x546   : > { %3846 = vmatprep.subr.bf16.mxu1 %v4454_v8  ;;  %v2416_v44 = vrot.slane %v2411_v42, %v5465_v61 }
 0x548   : > { %3645 = vmatmul.mubr.msk.f32.vlgmr.msra.gmra.mrb[12].mxu1 %vm834_vm2, %v5030_v54 }
 0x549   : > { %3848 = vmatpush1.bf16.msra.mxu1 %v4465_v14  ;;  %2404 = vmatprep.mubr.f32.mxu1 %v5434_v62 }
 0x54a   : > { %3850 = vmatprep.subr.bf16.mxu1 %v4490_v22 }
 0x54d   : > { %3852 = vmatpush1.bf16.msra.mxu1 %v4501_v26 }
 0x54e   : > { %3854 = vmatprep.subr.bf16.mxu1 %v4526_v34 }
 0x551   : > { %3856 = vmatpush1.bf16.msra.mxu1 %v4537_v39 }
 0x552   : > { %3858 = vmatprep.subr.bf16.mxu1 %v4562_v47 }
 0x555   : > { %3860 = vmatpush1.bf16.msra.mxu1 %v4573_v52 }
 0x556   : > { %3878 = vmatprep.subr.bf16.mxu1 %v4454_v8  ;;  %v830_v8 = vadd.f32 1.0, %v4042_v51  ;;  %v2420_v51 = vrot.slane %v2411_v42, %v5466_v31 }
 0x558   : > { %4043 = vrcp.f32 %v830_v8 }
 0x562   : > { %v4044_v55 = vpop.eup %4043 }
 0x563   : > { %v833_v29 = vmul.f32 %v4044_v55, %v4399_v36  ;;  %v3398_v36 = vld [vmem:[%s5318_s19] ss:$0 sm:$0xff] }
 0x60b   : > { %v3465_v12 = vpop.f32.mrb[10].mxu1 }
 0x60c   : > { %v3466_v48 = vpop.f32.mrb[11].mxu1 }
 0x60d   : > { %v3467_v24 = vadd.f32 %v3466_v48, %v3465_v12  ;;  %v5467_v12 = vsub.s32 2, %v5464_v45 }
 0x60f   : > { %v3500_v3 = vpop.f32.mrb[12].mxu0  ;;  %v1975_v25 = vadd.f32 %v3467_v24, %v1907_v38  ;;  %v2424_v0 = vrot.slane %v2411_v42, %v5467_v12  ;;  %v5468_v24 = vsub.s32 3, %v5464_v45 }
 0x610   : > { %v3501_v10 = vpop.f32.mrb[13].mxu0 }
 0x611   : > { %v3502_v37 = vadd.f32 %v3501_v10, %v3500_v3  ;;  %v2428_v38 = vrot.slane %v2411_v42, %v5468_v24 }
 0x613   : > { %v5054_v19 = vadd.f32 %v3502_v37, %v1975_v25 }
 0x61b   : > { %v2170_v59 = vpop.f32.mrb[12].mxu1 }
 0x61c   : > { %2855 = vrot.lane.b32.xlu1 %v2170_v59, %s5436_s6  ;;  %2591 = vrot.lane.b32.xlu0 %v2170_v59, %s5437_s24  ;;  %v3646_v46 = vpop.f32.mrb[13].mxu1  ;;  %s5375_s6 = sshll.u32 %s4302_s5, 7  ;;  %s712_s24 = scalar_lea.vmem [#allocation5], %s5374_s1 }
 0x61d   : > { %3650 = vmatmul.mubr.msk.f32.vlgmr.msra.gmra.mrb[14].mxu0 %vm974_vm5, %v2170_v59  ;;  %s5228_s10 = scalar_lea.hbm %s5322_s23, %s5375_s6  ;;  %s3273_s2 = sshll.u32 %s712_s24, 4  ;;  %s3274_s2 = int_to_ptr.vmem [resolvable:$true] %s3273_s2 }
 0x61e   : > { %3832 = vmatpush1.bf16.msra.mxu0 %v4456_v9  ;;  %2333 = vmatprep.mubr.f32.mxu0 %v5434_v62  ;;  %s4063_s1 = scalar_lea.vmem %s4062_s11, 256  ;;  %p4064_p0 = scmp.lt.s32.totalorder %s3274_s2, %s4062_s11 }
 0x61f   : > { %3834 = vmatprep.subr.bf16.mxu0 %v4479_v18 }
 0x620   : > { %3155 = vrot.lane.b32.xlu1 %v833_v29, %s4158_s27 }
 0x622   : > { %3836 = vmatpush1.bf16.msra.mxu0 %v4492_v23 }
 0x623   : > { %3838 = vmatprep.subr.bf16.mxu0 %v4515_v30 }
 0x626   : > { %3840 = vmatpush1.bf16.msra.mxu0 %v4528_v35 }
 0x627   : > { %3842 = vmatprep.subr.bf16.mxu0 %v4551_v43 }
 0x62a   : > { %3844 = vmatpush1.bf16.msra.mxu0 %v4564_v49 }
 0x62b   : > { %3862 = vmatprep.subr.bf16.mxu0 %v4443_v4 }
 0x6f0   : > { %v2254_v60 = vpop.f32.mrb[14].mxu0 }
 0x6f1   : > { %v2255_v13 = vadd.f32 %v3398_v36, %v2254_v60  ;;  %v3651_v33 = vpop.f32.mrb[15].mxu0 }
 0x6f3   : > { %v2259_v16 = vmin.f32 %v2255_v13, 20.0  ;;  %vm2258_vm10 = vcmp.gt.f32.partialorder %v2255_v13, 20.0 }
 0x6f5   : > { %v2260_v21 = vmul.f32 1.442695, %v2259_v16 }
 0x6f7   : > { %4045 = vpow2.f32 %v2260_v21 }
 0x701   : > { %v4046_v50 = vpop.eup %4045 }
 0x702   : > { %v2262_v1 = vadd.f32 1.0, %v4046_v50 }
 0x704   : > { %4047 = vlog2.f32 %v2262_v1 }
 0x70e   : > { %v4048_v20 = vpop.eup %4047 }
 0x70f   : > { %v2264_v63 = vmul.f32 0.6931472, %v4048_v20 }
 0x711   : > { %v2265_v28 = vsel %vm2258_vm10, %v2255_v13, %v2264_v63 }
 0x712   : > { %3401 = vmatmul.mubr.msk.f32.vlgmr.msra.gmra.mrb[16].mxu0 %vm834_vm2, %v2265_v28  ;;  %3402 = vmatmul.mubr.msk.f32.vlgmr.msra.gmra.mrb[14].mxu1 %vm834_vm2, %v2265_v28  ;;  %v2445_v4 = vmul.f32 %v2265_v28, %v5030_v54 }
 0x713   : > { %3864 = vmatpush1.bf16.msra.mxu0 %v4456_v9  ;;  %3880 = vmatpush1.bf16.msra.mxu1 %v4465_v14  ;;  %v2856_v9 = vpop.permute.xlu1 %2855  ;;  %v2592_v14 = vpop.permute.xlu0 %2591 }
 0x714   : > { %3866 = vmatprep.subr.bf16.mxu0 %v4479_v18  ;;  %3882 = vmatprep.subr.bf16.mxu1 %v4490_v22  ;;  %v5438_v18 = vld [vmem:[#allocation14_spill] sm:$0xff]  ;;  %v5439_v22 = vld [vmem:[#allocation15_spill] sm:$0xff] }
 0x715   : > { %2513 = vmatprep.mubr.f32.mxu0 %v5434_v62  ;;  %2584 = vmatprep.mubr.f32.mxu1 %v5434_v62 }
 0x717   : > { %3868 = vmatpush1.bf16.msra.mxu0 %v4492_v23  ;;  %3884 = vmatpush1.bf16.msra.mxu1 %v4501_v26  ;;  %v5440_v23 = vld [vmem:[#allocation21_spill] sm:$0xff]  ;;  %v5441_v26 = vld [vmem:[#allocation24_spill] sm:$0xff] }
 0x718   : > { %3870 = vmatprep.subr.bf16.mxu0 %v4515_v30  ;;  %3886 = vmatprep.subr.bf16.mxu1 %v4526_v34  ;;  %v5442_v30 = vld [vmem:[#allocation16_spill] sm:$0xff]  ;;  %v5443_v34 = vld [vmem:[#allocation17_spill] sm:$0xff] }
 0x71b   : > { %3872 = vmatpush1.bf16.msra.mxu0 %v4528_v35  ;;  %3888 = vmatpush1.bf16.msra.mxu1 %v4537_v39  ;;  %v5444_v35 = vld [vmem:[#allocation25_spill] sm:$0xff]  ;;  %v5445_v39 = vld [vmem:[#allocation28_spill] sm:$0xff] }
 0x71c   : > { %3874 = vmatprep.subr.bf16.mxu0 %v4551_v43  ;;  %3890 = vmatprep.subr.bf16.mxu1 %v4562_v47  ;;  %v5446_v43 = vld [vmem:[#allocation18_spill] sm:$0xff]  ;;  %v5447_v47 = vld [vmem:[#allocation19_spill] sm:$0xff] }
 0x71f   : > { %3876 = vmatpush1.bf16.msra.mxu0 %v4564_v49  ;;  %3892 = vmatpush1.bf16.msra.mxu1 %v4573_v52  ;;  %v5448_v49 = vld [vmem:[#allocation29_spill] sm:$0xff]  ;;  %v5449_v52 = vld [vmem:[#allocation32_spill] sm:$0xff] }
 0x720   : > { %2595 = vmatprep.subr.mxu0 %v4602_v2  ;;  %2930 = vmatprep.subr.mxu1 %v4619_v7 }
 0x722   : > { %3403 = vmatmul.mubr.msk.f32.vlgmr.msra.gmra.mrb[18].mxu0 %vm834_vm2, %v2445_v4  ;;  %3404 = vmatmul.mubr.msk.f32.vlgmr.msra.gmra.mrb[16].mxu1 %vm834_vm2, %v2445_v4 }
 0x723   : > { %2596 = vmatpush1.msra.mxu0 %v4611_v6  ;;  %2659 = vmatprep.mubr.f32.mxu0 %v5434_v62 }
 0x724   : > { %2931 = vmatpush1.msra.mxu1 %v4628_v11  ;;  %2994 = vmatprep.mubr.f32.mxu1 %v5434_v62 }
 0x725   : > { %2666 = vmatprep.subr.mxu0 %v4619_v7  ;;  %3926 = vmatprep.subr.bf16.mxu1 %v4687_v40  ;;  %v5452_v7 = vld [vmem:[#allocation33_spill] sm:$0xff]  ;;  %v5455_v40 = vld [vmem:[#allocation26_spill] sm:$0xff] }
 0x726   : > { %3405 = vmatmul.mubr.msk.f32.vlgmr.msra.gmra.mrb[20].mxu0 %vm1423_vm7, %v2592_v14  ;;  %3408 = vmatmul.mubr.msk.f32.vlgmr.msra.gmra.mrb[18].mxu1 %vm1423_vm7, %v2856_v9 }
 0x727   : > { %2667 = vmatpush1.msra.mxu0 %v4628_v11  ;;  %2730 = vmatprep.mubr.f32.mxu0 %v5434_v62  ;;  %v5453_v11 = vld [vmem:[#allocation36_spill] sm:$0xff] }
 0x728   : > { %2859 = vmatprep.subr.mxu0 %v4602_v2  ;;  %3928 = vmatpush3.bf16.msra.mxu1 %v4689_v41  ;;  %v5450_v2 = vld [vmem:[#allocation20_spill] sm:$0xff]  ;;  %v5456_v41 = vld [vmem:[#allocation37_spill] sm:$0xff] }
 0x729   : > { %3930 = vmatprep.subr.bf16.mxu1 %v4723_v57  ;;  %v5457_v57 = vld [vmem:[#allocation38_spill] sm:$0xff] }
 0x72a   : > { %3406 = vmatmul.mubr.msk.f32.vlgmr.msra.gmra.mrb[22].mxu0 %vm1423_vm7, %v2592_v14 }
 0x72b   : > { %2860 = vmatpush1.msra.mxu0 %v4611_v6  ;;  %2923 = vmatprep.mubr.f32.mxu0 %v5434_v62  ;;  %v5451_v6 = vld [vmem:[#allocation22_spill] sm:$0xff] }
 0x72c   : > { %3894 = vmatprep.subr.bf16.mxu0 %v4646_v17  ;;  %3932 = vmatpush3.bf16.msra.mxu1 %v4725_v58  ;;  %v5454_v17 = vld [vmem:[#allocation23_spill] sm:$0xff] }
 0x72d   : > { %3934 = vmatprep.subr.bf16.mxu1 %v4753_v15  ;;  %v5458_v58 = vld [vmem:[#allocation27_spill] sm:$0xff]  ;;  %v5459_v15 = vld [vmem:[#allocation30_spill] sm:$0xff] }
 0x72e   : > { %3407 = vmatmul.mubr.msk.f32.vlgmr.msra.gmra.mrb[24].mxu0 %vm1423_vm7, %v2856_v9 }
 0x72f   : > { %3896 = vmatpush3.bf16.msra.mxu0 %v5438_v18 }
 0x730   : > { %3898 = vmatprep.subr.bf16.mxu0 %v5439_v22  ;;  %3936 = vmatpush3.bf16.msra.mxu1 %v5440_v23 }
 0x731   : > { %3938 = vmatprep.subr.bf16.mxu1 %v5441_v26 }
 0x733   : > { %3900 = vmatpush3.bf16.msra.mxu0 %v5442_v30 }
 0x734   : > { %3902 = vmatprep.subr.bf16.mxu0 %v5443_v34  ;;  %3940 = vmatpush3.bf16.msra.mxu1 %v5444_v35 }
 0x735   : > { %3942 = vmatprep.subr.bf16.mxu1 %v5445_v39 }
 0x737   : > { %3904 = vmatpush3.bf16.msra.mxu0 %v5446_v43 }
 0x738   : > { %3906 = vmatprep.subr.bf16.mxu0 %v5447_v47  ;;  %3944 = vmatpush3.bf16.msra.mxu1 %v5448_v49 }
 0x739   : > { %3946 = vmatprep.subr.bf16.mxu1 %v5449_v52 }
 0x73b   : > { %3908 = vmatpush3.bf16.msra.mxu0 %v5450_v2 }
 0x73c   : > { %3910 = vmatprep.subr.bf16.mxu0 %v5451_v6  ;;  %3948 = vmatpush3.bf16.msra.mxu1 %v5452_v7 }
 0x73d   : > { %3950 = vmatprep.subr.bf16.mxu1 %v5453_v11 }
 0x73f   : > { %3912 = vmatpush3.bf16.msra.mxu0 %v5454_v17 }
 0x740   : > { %3914 = vmatprep.subr.bf16.mxu0 %v5455_v40  ;;  %3952 = vmatpush3.bf16.msra.mxu1 %v5456_v41 }
 0x741   : > { %3954 = vmatprep.subr.bf16.mxu1 %v5457_v57 }
 0x743   : > { %3916 = vmatpush3.bf16.msra.mxu0 %v5458_v58 }
 0x744   : > { %3918 = vmatprep.subr.bf16.mxu0 %v5459_v15  ;;  %3956 = vmatpush3.bf16.msra.mxu1 %v5460_v32 }
 0x747   : > { %3920 = vmatpush3.bf16.msra.mxu0 %v5461_v27 }
 0x748   : > { %3922 = vmatprep.subr.bf16.mxu0 %v5462_v5 }
 0x74b   : > { %3924 = vmatpush3.bf16.msra.mxu0 %v5463_v53 }
 0x74c   : > { %3957 = vmatprep.subr.bf16.mxu0 %v5435_v56 }
 0x7e5   : > { %v2335_v48 = vpop.f32.mrb[16].mxu0  ;;  %v2406_v8 = vpop.f32.mrb[14].mxu1 }
 0x7e6   : > { %v2433_v3 = vmul.f32 %v2416_v44, %v2335_v48  ;;  %v2337_v10 = vpop.f32.mrb[17].mxu0  ;;  %v2408_v25 = vpop.f32.mrb[15].mxu1  ;;  %v2435_v59 = vmul.f32 %v2424_v0, %v2406_v8 }
 0x7e7   : > { %v2434_v37 = vmul.f32 %v2420_v51, %v2337_v10  ;;  %v2436_v29 = vmul.f32 %v2428_v38, %v2408_v25 }
 0x7e8   : > { %v2437_v55 = vmul.f32 1.442695, %v2433_v3  ;;  %v2441_v36 = vmul.f32 1.442695, %v2435_v59 }
 0x7e9   : > { %v2439_v46 = vmul.f32 1.442695, %v2434_v37  ;;  %v2443_v60 = vmul.f32 1.442695, %v2436_v29 }
 0x7ea   : > { %4049 = vpow2.f32 %v2437_v55 }
 0x7eb   : > { %4051 = vpow2.f32 %v2439_v46 }
 0x7ec   : > { %4053 = vpow2.f32 %v2441_v36 }
 0x7ed   : > { %4055 = vpow2.f32 %v2443_v60 }
 0x7f4   : > { %v4050_v16 = vpop.eup %4049 }
 0x7f5   : > { %v2515_v13 = vpop.f32.mrb[18].mxu0  ;;  %v2586_v33 = vpop.f32.mrb[16].mxu1  ;;  %v2745_v28 = vrot.slane %v4050_v16, 1 }
 0x7f6   : > { %v2517_v21 = vpop.f32.mrb[19].mxu0  ;;  %v2588_v50 = vpop.f32.mrb[17].mxu1 }
 0x7f7   : > { %v4052_v1 = vpop.eup %4051  ;;  %v2754_v43 = vsel %vm2753_vm11, %v2745_v28, 1.0 }
 0x7f8   : > { %v4054_v4 = vpop.eup %4053  ;;  %v2746_v22 = vrot.slane %v4052_v1, 1  ;;  %v2782_v57 = vmul.f32 %v4050_v16, %v2754_v43 }
 0x7f9   : > { %v2661_v20 = vpop.f32.mrb[20].mxu0  ;;  %v5153_v63 = vpop.f32.mrb[18].mxu1  ;;  %v2747_v39 = vrot.slane %v4054_v4, 1 }
 0x7fa   : > { %v2737_v9 = vmul.f32 %v2661_v20, %v2515_v13  ;;  %v2663_v14 = vpop.f32.mrb[21].mxu0  ;;  %v5155_v18 = vpop.f32.mrb[19].mxu1  ;;  %v2755_v6 = vsel %vm2753_vm11, %v2746_v22, 1.0  ;;  %v2790_v8 = vrot.slane %v2782_v57, 2 }
 0x7fb   : > { %v4056_v23 = vpop.eup %4055  ;;  %v2738_v26 = vmul.f32 %v2663_v14, %v2517_v21  ;;  %v2756_v15 = vsel %vm2753_vm11, %v2747_v39, 1.0  ;;  %v2783_v5 = vmul.f32 %v4052_v1, %v2755_v6 }
 0x7fc   : > { %v2762_v30 = vrot.slane %v2737_v9, 1  ;;  %v2748_v2 = vrot.slane %v4056_v23, 1  ;;  %v2784_v0 = vmul.f32 %v4054_v4, %v2756_v15  ;;  %v2799_v60 = vsel %vm2798_vm12, %v2790_v8, 1.0 }
 0x7fd   : > { %v2763_v34 = vrot.slane %v2738_v26, 1  ;;  %v2732_v35 = vpop.f32.mrb[22].mxu0  ;;  %v2791_v10 = vrot.slane %v2783_v5, 2 }
 0x7fe   : > { %v2770_v47 = vsel %vm2753_vm11, %v2762_v30, 0.0  ;;  %v2739_v49 = vmul.f32 %v2732_v35, %v2586_v33  ;;  %v2734_v52 = vpop.f32.mrb[23].mxu0  ;;  %v2757_v45 = vsel %vm2753_vm11, %v2748_v2, 1.0  ;;  %v2792_v29 = vrot.slane %v2784_v0, 2 }
 0x7ff   : > { %v2774_v7 = vmul.f32 %v4050_v16, %v2770_v47  ;;  %v2771_v11 = vsel %vm2753_vm11, %v2763_v34, 0.0  ;;  %v2740_v17 = vmul.f32 %v2734_v52, %v2588_v50  ;;  %v2785_v3 = vmul.f32 %v4056_v23, %v2757_v45 }
 0x800   : > { %v2775_v40 = vmul.f32 %v4052_v1, %v2771_v11  ;;  %v2764_v41 = vrot.slane %v2739_v49, 1  ;;  %v2800_v16 = vsel %vm2798_vm12, %v2791_v10, 1.0  ;;  %v2801_v22 = vsel %vm2798_vm12, %v2792_v29, 1.0  ;;  %v3160_v11 = vld [vmem:[%s5469_s8 + $0x8] sm:$0xff]  ;;  %v3156_v29 = vpop.permute.xlu1 %3155 }
 0x801   : > { %v2778_v58 = vadd.f32 %v2774_v7, %v2737_v9  ;;  %v2765_v32 = vrot.slane %v2740_v17, 1  ;;  %v2925_v27 = vpop.f32.mrb[24].mxu0  ;;  %v2793_v50 = vrot.slane %v2785_v3, 2  ;;  %v2827_v9 = vmul.f32 %v2799_v60, %v2782_v57  ;;  %v3159_v7 = vld [vmem:[%s5469_s8] sm:$0xff] }
 0x802   : > { %v2779_v53 = vadd.f32 %v2775_v40, %v2738_v26  ;;  %v2772_v42 = vsel %vm2753_vm11, %v2764_v41, 0.0  ;;  %v2927_v61 = vpop.f32.mrb[25].mxu0  ;;  %v2828_v30 = vmul.f32 %v2800_v16, %v2783_v5  ;;  %v2829_v52 = vmul.f32 %v2801_v22, %v2784_v0 }
 0x803   : > { %v2807_v44 = vrot.slane %v2778_v58, 2  ;;  %v2776_v31 = vmul.f32 %v4054_v4, %v2772_v42  ;;  %v2773_v51 = vsel %vm2753_vm11, %v2765_v32, 0.0  ;;  %v2802_v43 = vsel %vm2798_vm12, %v2793_v50, 1.0 }
 0x804   : > { %v2808_v12 = vrot.slane %v2779_v53, 2  ;;  %v2777_v48 = vmul.f32 %v4056_v23, %v2773_v51  ;;  %v2830_v41 = vmul.f32 %v2802_v43, %v2785_v3 }
 0x805   : > { %v2815_v24 = vsel %vm2798_vm12, %v2807_v44, 0.0  ;;  %v2780_v38 = vadd.f32 %v2776_v31, %v2739_v49 }
 0x806   : > { %v2816_v25 = vsel %vm2798_vm12, %v2808_v12, 0.0  ;;  %v2781_v37 = vadd.f32 %v2777_v48, %v2740_v17  ;;  %v2819_v55 = vmul.f32 %v2815_v24, %v2782_v57  ;;  %v3165_v12 = vld [vmem:[%s5469_s8 + $0x30] sm:$0xff]  ;;  %v3409_v24 = vld [vmem:[%s5320_s21] ss:$0 sm:$0xff] }
 0x807   : > { %v2809_v59 = vrot.slane %v2780_v38, 2  ;;  %v2820_v46 = vmul.f32 %v2816_v25, %v2783_v5 }
 0x808   : > { %v2810_v36 = vrot.slane %v2781_v37, 2  ;;  %v2823_v13 = vadd.f32 %v2819_v55, %v2778_v58 }
 0x809   : > { %v2817_v33 = vsel %vm2798_vm12, %v2809_v59, 0.0  ;;  %v2824_v21 = vadd.f32 %v2820_v46, %v2779_v53  ;;  %v3958_v53 = vpack.c.bf16 %v3160_v11, %v3159_v7 }
 0x80a   : > { %v2821_v1 = vmul.f32 %v2817_v33, %v2784_v0  ;;  %v2818_v20 = vsel %vm2798_vm12, %v2810_v36, 0.0  ;;  %v2835_v28 = vrot.slane %v2823_v13, 4  ;;  %v3166_v0 = vld [vmem:[%s5469_s8 + $0x38] sm:$0xff] }
 0x80b   : > { %v2822_v4 = vmul.f32 %v2818_v20, %v2785_v3  ;;  %v2836_v14 = vrot.slane %v2824_v21, 4  ;;  %v3967_v48 = vpack.c.bf16 %v3166_v0, %v3165_v12 }
 0x80c   : > { %v2825_v23 = vadd.f32 %v2821_v1, %v2780_v38  ;;  %v2843_v26 = vsel %vm1673_vm9, %v2835_v28, 0.0 }
 0x80d   : > { %v2826_v34 = vadd.f32 %v2822_v4, %v2781_v37  ;;  %v2847_v35 = vmul.f32 %v2843_v26, %v2827_v9  ;;  %v2844_v39 = vsel %vm1673_vm9, %v2836_v14, 0.0 }
 0x80e   : > { %v2837_v47 = vrot.slane %v2825_v23, 4  ;;  %v2848_v49 = vmul.f32 %v2844_v39, %v2828_v30 }
 0x80f   : > { %v2838_v2 = vrot.slane %v2826_v34, 4  ;;  %v2851_v6 = vadd.f32 %v2847_v35, %v2823_v13 }
 0x810   : > { %v2845_v17 = vsel %vm1673_vm9, %v2837_v47, 0.0  ;;  %v2852_v40 = vadd.f32 %v2848_v49, %v2824_v21 }
 0x811   : > { %v2849_v57 = vmul.f32 %v2845_v17, %v2829_v52  ;;  %v2846_v58 = vsel %vm1673_vm9, %v2838_v2, 0.0  ;;  %v3001_v15 = vmul.f32 %v2925_v27, %v2851_v6  ;;  %v3161_v27 = vld [vmem:[%s5469_s8 + $0x10] sm:$0xff] }
 0x812   : > { %v3002_v32 = vmul.f32 %v2927_v61, %v2852_v40  ;;  %v2850_v5 = vmul.f32 %v2846_v58, %v2830_v41  ;;  %v3162_v61 = vld [vmem:[%s5469_s8 + $0x18] sm:$0xff] }
 0x813   : > { %v2853_v42 = vadd.f32 %v2849_v57, %v2825_v23  ;;  %v3961_v51 = vpack.c.bf16 %v3162_v61, %v3161_v27 }
 0x814   : > { %3077 = vmatprep.mubr.f32.mxu0 %v3002_v32  ;;  %v2854_v45 = vadd.f32 %v2850_v5, %v2826_v34 }
 0x815   : > { %3078 = vmatmul.mubr.f32.vlgmr.msra.gmra.mrb[26].mxu0 %v3001_v15  ;;  %v3003_v44 = vmul.f32 %v5153_v63, %v2853_v42  ;;  %v3164_v63 = vld [vmem:[%s5469_s8 + $0x28] sm:$0xff] }
 0x816   : > { %v3004_v31 = vmul.f32 %v5155_v18, %v2854_v45  ;;  %3959 = vmatpush3.bf16.msra.mxu0 %v3958_v53  ;;  %3668 = vmatprep.mubr.msk.f32.mxu0 %vm4154_vm1, %v5434_v62  ;;  %v3163_v62 = vld [vmem:[%s5469_s8 + $0x20] sm:$0xff]  ;;  %s4057_s8 = scalar_lea.vmem %s3274_s2, 128 }
 0x817   : > { %3960 = vmatprep.subr.bf16.mxu0 %v5435_v56  ;;  %v3964_v18 = vpack.c.bf16 %v3164_v63, %v3163_v62  ;;  %p4058_p11 = scmp.ne.s32.totalorder %s3274_s2, %s4057_s8  ;;  %p4065_p1 = scmp.lt.s32.totalorder %s4063_s1, %s4057_s8 }
 0x818   : > { %3147 = vmatprep.mubr.f32.mxu1 %v3004_v31 }
 0x819   : > { %3148 = vmatmul.mubr.f32.vlgmr.msra.gmra.mrb[20].mxu1 %v3003_v44  ;;  %p4059_p12 = pnand %p4058_p11, %p4319_p5  ;;  %p4066_p2 = por %p4065_p1, %p4064_p0 }
 0x81a   : > { %3962 = vmatpush3.bf16.msra.mxu0 %v3961_v51 }
 0x81b   : > { %3963 = vmatprep.subr.bf16.mxu0 %v5435_v56  ;;  %p4060_p13 = pneg %p4059_p12 }
 0x81d   : > { %p4067_p3 = pnand %p4066_p2, %p4060_p13 }
 0x81e   : > { %3965 = vmatpush3.bf16.msra.mxu0 %v3964_v18 }
 0x81f   : > { %3966 = vmatprep.subr.bf16.mxu0 %v5435_v56  ;;  %v3012_v56 = vmul.f32 %v3409_v24, %v5030_v54  ;;  %v5470_v54 = vld [vmem:[#allocation13_spill] sm:$0xff] }
 0x820   : > { %719 = vst.msk [vmem:[%s712_s24] sm:$0xff] %vm718_vm0, %v5470_v54 }
 0x822   : > { %3968 = vmatpush3.bf16.msra.mxu0 %v3967_v48 }
 0x8e8   : > { %v3546_v8 = vpop.f32.mrb[26].mxu0 }
 0x8e9   : > { %v3547_v38 = vpop.f32.mrb[27].mxu0 }
 0x8ea   : > { %v3548_v3 = vadd.f32 %v3547_v38, %v3546_v8 }
 0x8ec   : > { %v3581_v10 = vpop.f32.mrb[20].mxu1  ;;  %v3080_v37 = vadd.f32 %v3548_v3, %v3012_v56 }
 0x8ed   : > { %v3582_v25 = vpop.f32.mrb[21].mxu1 }
 0x8ee   : > { %v3583_v55 = vadd.f32 %v3582_v25, %v3581_v10 }
 0x8f0   : > { %v3150_v59 = vadd.f32 %v3583_v55, %v3080_v37 }
 0x8f2   : > { %v3153_v46 = vadd.f32 %v3150_v59, %v5054_v19 }
 0x8f4   : > { %v3158_v36 = vmul.f32 %v3156_v29, %v3153_v46 }
 0x8f6   : > { %3669 = vmatmul.mubr.msk.f32.vlgmr.msra.gmra.mrb[28].mxu0 %vm834_vm2, %v3158_v36 }
 0x8f7   : > { %4070 = shalt.err (!%p4067_p3)
}
 0x8f8   : > { %s4071_s24 = scalar_lea.hbm %s5228_s10, 128  ;;  %s4075_s9 = scalar_lea.hbm %s5322_s23, 256 }
 0x8f9   : > { %p4072_p4 = scmp.ne.s32.totalorder %s5228_s10, %s4071_s24  ;;  %p4076_p9 = scmp.lt.u32.totalorder %s5228_s10, %s5322_s23 }
 0x8fa   : > { %p4077_p10 = scmp.lt.u32.totalorder %s4075_s9, %s4071_s24  ;;  %p4079_p12 = scmp.lt.u32.totalorder %s4071_s24, %s5228_s10 }
 0x8fb   : > { %p4073_p7 = pnand %p4072_p4, %p4319_p5 }
 0x8fc   : > { %p4078_p11 = por %p4077_p10, %p4076_p9 }
 0x8fd   : > { %p4074_p8 = pneg %p4073_p7 }
 0x8fe   : > { %p4080_p13 = por %p4079_p12, %p4078_p11 }
 0x900   : > { %p4081_p0 = pnand %p4080_p13, %p4074_p8 }
 0x902   : > { %4084 = shalt.err (!%p4081_p0)
}
 0x903   : > { %3970 = dma.vmem_to_hbm [thread:$0]  (%p4319_p5), %s3274_s2, 128, %s5228_s10, %s3247_s0  }
 0x904   : > { %s5471_s8 = sshll.u32 %s5215_s3, 3  ;;  %s5472_s29 = sshll.u32 %s4302_s5, 7 }
 0x905   : > { %s705_s1 = scalar_lea.vmem [#allocation3], %s5471_s8  ;;  %s5255_s9 = scalar_lea.hbm %s5321_s22, %s5472_s29 }
 0x906   : > { %s3260_s27 = sshll.u32 %s705_s1, 4  ;;  %s3242_s24 = scalar_lea.sflag [#allocation4], %s5215_s3  ;;  %s5257_s27 = int_to_ptr.vmem [resolvable:$true] %s3260_s27 }
 0x907   : > { %s4085_s10 = scalar_lea.vmem %s5257_s27, 128  ;;  %s4160_s5 = smov [#allocation3]  }
 0x908   : > { %p4086_p1 = scmp.ne.s32.totalorder %s5257_s27, %s4085_s10  ;;  %s4089_s2 = sshll.u32 %s4160_s5, 4  ;;  %s4090_s2 = int_to_ptr.vmem [resolvable:$false] %s4089_s2 }
 0x909   : > { %s4091_s0 = scalar_lea.vmem %s4090_s2, 256  ;;  %p4092_p4 = scmp.lt.s32.totalorder %s5257_s27, %s4090_s2 }
 0x90a   : > { %p4087_p2 = pnand %p4086_p1, %p4319_p5  ;;  %p4093_p7 = scmp.lt.s32.totalorder %s4091_s0, %s4085_s10 }
 0x90c   : > { %p4088_p3 = pneg %p4087_p2  ;;  %p4094_p8 = por %p4093_p7, %p4092_p4 }
 0x90e   : > { %p4095_p9 = pnand %p4094_p8, %p4088_p3 }
 0x9c9   : > { %v3236_v19 = vpop.f32.mrb[28].mxu0 }
 0x9ca   : > { %3240 = vst.msk [vmem:[%s705_s1] sm:$0xff] %vm718_vm0, %v3236_v19  ;;  %v3670_v60 = vpop.f32.mrb[29].mxu0 }
 0x9cb   : > { %4098 = shalt.err (!%p4095_p9)
}
 0x9cc   : > { %s4099_s3 = scalar_lea.hbm %s5255_s9, 128  ;;  %s4103_s29 = scalar_lea.hbm %s5321_s22, 256 }
 0x9cd   : > { %p4100_p10 = scmp.ne.s32.totalorder %s5255_s9, %s4099_s3  ;;  %p4104_p13 = scmp.lt.u32.totalorder %s5255_s9, %s5321_s22 }
 0x9ce   : > { %p4105_p0 = scmp.lt.u32.totalorder %s4103_s29, %s4099_s3  ;;  %p4107_p2 = scmp.lt.u32.totalorder %s4099_s3, %s5255_s9 }
 0x9cf   : > { %p4101_p11 = pnand %p4100_p10, %p4319_p5 }
 0x9d0   : > { %p4106_p1 = por %p4105_p0, %p4104_p13 }
 0x9d1   : > { %p4102_p12 = pneg %p4101_p11 }
 0x9d2   : > { %p4108_p3 = por %p4107_p2, %p4106_p1 }
 0x9d4   : > { %p4109_p4 = pnand %p4108_p3, %p4102_p12 }
 0x9d6   : > { %4112 = shalt.err (!%p4109_p4)
}
 0x9d7   : > { %3969 = dma.vmem_to_hbm [thread:$0]  (%p4319_p5), %s5257_s27, 128, %s5255_s9, %s3242_s24  }
 0x9d8 PF: > { %p3980_p7 = scmp.ge.s32.totalorder %s4151_s25, 2  ;;  %s3285_s5 = sand.u32 1, %s4139_s4  }
 0x9d9   : > { %s3286_s2 = scalar_lea.sflag [#allocation4], %s3285_s5 }
 0x9da   : > { %p3974_p8 = pnand %p3980_p7, %p4323_p6 }
 0x9dc   : > { %4130 = dma.done.wait (!%p3974_p8), %s3286_s2, 128  }
 0x9dd   : > { %4132 = vsyncadd (!%p3974_p8), %s3286_s2, 4294967168  ;;  %s3295_s0 = scalar_lea.sflag [#allocation6], %s3285_s5 }
 0x9de   : > { %4134 = dma.done.wait (!%p3974_p8), %s3295_s0, 128  }
 0x9df   : > { %4136 = vsyncadd (!%p3974_p8), %s3295_s0, 4294967168  ;;  %s5474_s25 = sld [smem:[#allocation10_spill]]  ;;  %s5475_s7 = sld [smem:[#allocation9_spill]] }
 0x9e0   : > { %s5476_s24 = sld [smem:[#allocation11_spill]]  ;;  %s5477_s4 = smov %s4143_s30 }
 0x9e5   : > { %p37_p5 = scmp.ge.s32.totalorder %s5474_s25, 4   ;;  %s5478_s30 = smov %s5475_s7 }
 0x9e7   :  { %39 = sbr.rel (!%p37_p5) target bundleno = 18 (0x12), region = 160 }
 0x9ee   :  { %3300 = vsyncpa [#allocation4], 1 }
 0x9ef   :  { %3302 = vsyncpa [#allocation4 + $0x1], 1 }
 0x9f0   :  { %3303 = vsyncpa [#allocation6], 1 }
 0x9f1   :  { %3305 = vsyncpa [#allocation6 + $0x1], 1 }

</bundles_post_ra>
